<compile_context>
chip_gen: v7x
topology: tpu7x:2x2x1
jax: 0.10.0
libtpu: 0.0.40
codegen_flags: <defaults>
</compile_context>

<pallas_src>
import functools

import jax
import jax.numpy as jnp
from jax.experimental import pallas as pl
from jax.experimental.pallas import tpu as pltpu


def _round_up(x, m):
    return ((x + m - 1) // m) * m


# sublane granularity per itemsize (bytes): f32 -> 8, bf16 -> 16, int8 -> 32
_SUBLANE = {4: 8, 2: 16, 1: 32}


def _padded_block_bytes(shape, itemsize):
    """VMEM footprint of one block: last dim rounded up to 128 lanes, second-
    minor dim rounded up to the dtype's sublane granularity."""
    shape = list(shape)
    shape[-1] = _round_up(shape[-1], 128)
    if len(shape) >= 2:
        shape[-2] = _round_up(shape[-2], _SUBLANE.get(itemsize, 8))
    n = 1
    for s in shape:
        n *= s
    return n * itemsize


def _tpu_vmem_capacity_bytes():
    try:
        return int(pltpu.get_tpu_info().vmem_capacity_bytes)
    except Exception:
        return 128 * 1024 * 1024  # v5e / v6e assumption if query unavailable


def gcn_kernel(text_ref, adj_ref, w_ref, w1_ref, w2_ref, vec_ref, out_ref,
               *, bt, n, d_real, reassociate):
    """One grid step = bt (row-padded) batch elements, flattened to m = bt*n.

    text_ref : (m, Din)     bf16
    adj_ref  : (bt, n, n)   int8  (0/1 adjacency -> exact in bf16)
    w_ref    : (Din, Dp)    bf16  (out_features zero-padded to Dp, mult of 128)
    w1_ref   : (Dp, Dp)     bf16
    w2_ref   : (Dp, Dp)     bf16
    vec_ref  : (8, Dp)      f32   rows: 0=bias 1=b1 2=b2 3=gamma 4=beta 5=col-mask
    out_ref  : (m, Dp)      bf16  (lane-dense store; padding sliced by caller)
    """
    m = bt * n
    text = text_ref[...]                                  # (m, Din) bf16
    adj = adj_ref[...].astype(jnp.bfloat16)               # int8 -> bf16 (exact 0/1)

    # denom = sum(adj, dim=2, keepdim=True) + 1   (exact for 0/1 rows, n <= 256)
    denom = jnp.sum(adj, axis=2, keepdims=True, dtype=jnp.float32) + 1.0
    inv = 1.0 / denom                                     # tiny; exact divide

    if reassociate:
        # gcn = ((adj @ text) * inv) @ W  -- identical math (row scaling and W
        # commute); keeps the batched NxN matmul Din wide instead of Dp wide.
        at = jnp.einsum("bij,bjd->bid", adj, text.reshape(bt, n, -1),
                        preferred_element_type=jnp.float32)
        at = (at * inv).reshape(m, -1).astype(jnp.bfloat16)
        gcn = jnp.dot(at, w_ref[...], preferred_element_type=jnp.float32)
    else:
        hidden = jnp.dot(text, w_ref[...],
                         preferred_element_type=jnp.float32)        # (m, Dp) f32
        hidden = hidden.reshape(bt, n, -1).astype(jnp.bfloat16)
        gcn = jnp.einsum("bij,bjd->bid", adj, hidden,
                         preferred_element_type=jnp.float32) * inv
        gcn = gcn.reshape(m, -1)                                    # (m, Dp) f32

    # --- PositionwiseFeedForward_GCN: w2(relu(w1(x))) + residual + LayerNorm
    # (1x1 convs == pointwise linears, feature-last; dropout = identity in eval)
    b1 = vec_ref[1:2, :]
    b2 = vec_ref[2:3, :]
    h = jnp.dot(gcn.astype(jnp.bfloat16), w1_ref[...],
                preferred_element_type=jnp.float32) + b1
    h = jnp.maximum(h, 0.0)
    h = jnp.dot(h.astype(jnp.bfloat16), w2_ref[...],
                preferred_element_type=jnp.float32) + b2
    y = h + gcn                                                     # residual

    # LayerNorm over the REAL feature width (padded cols of y are exactly 0;
    # the column mask zeroes them again after mean-centering so the two-pass
    # variance only sees real columns).
    inv_d = 1.0 / d_real
    mask = vec_ref[5:6, :]
    mean = jnp.sum(y, axis=-1, keepdims=True) * inv_d
    yc = (y - mean) * mask
    var = jnp.sum(yc * yc, axis=-1, keepdims=True) * inv_d
    yn = yc * jax.lax.rsqrt(var + 1e-5)
    yn = yn * vec_ref[3:4, :] + vec_ref[4:5, :]                     # gamma/beta

    # + self.bias   (padded cols: gamma=beta=bias=mask=0 -> stay 0)
    out_ref[...] = (yn + vec_ref[0:1, :]).astype(out_ref.dtype)


def _vmem_estimate(bt, n, din, dp, out_itemsize, const_bufs):
    """Padding-aware per-step VMEM bytes for a candidate block batch."""
    m = bt * n
    # streamed, double-buffered blocks
    stream = 2 * (_padded_block_bytes((m, din), 2)         # text  bf16
                  + _padded_block_bytes((bt, n, n), 1)     # adj   int8
                  + _padded_block_bytes((m, dp), out_itemsize))  # out
    # resident grid-invariant blocks (single- or double-buffered)
    consts = const_bufs * (_padded_block_bytes((din, dp), 2)
                           + 2 * _padded_block_bytes((dp, dp), 2)
                           + _padded_block_bytes((8, dp), 4))
    # live f32 intermediates (hidden/gcn/h/y) + bf16 adj copy + row stats
    inter = (4 * _padded_block_bytes((m, dp), 4)
             + _padded_block_bytes((bt, n, n), 2)
             + 3 * _padded_block_bytes((m, 1), 4))
    return stream + consts + inter


def _choose_block_batch(B, n, din, dp, out_itemsize, budget, const_bufs,
                        require_multi_step):
    """Largest Bt dividing B whose padding-aware footprint fits the budget.
    On v7x (require_multi_step) keep G = B/Bt >= 2 so both TCs get grid work."""
    divisors = [bt for bt in range(1, B + 1) if B % bt == 0]
    if require_multi_step and B >= 2:
        divisors = [bt for bt in divisors if B // bt >= 2]
    if not divisors:
        return 1
    best = divisors[0]
    for bt in divisors:            # ascending; keep the largest that fits
        if _vmem_estimate(bt, n, din, dp, out_itemsize, const_bufs) <= budget:
            best = bt
    return best


def graph_convolution(text, adj, params, *, out_dtype=jnp.bfloat16,
                      return_padded=False):
    """Pallas forward of GraphConvolution.

    `adj` must be a 0/1 adjacency matrix (the int8/bf16 casts are exact only
    under that assumption).  Supplying `text` as bf16 and `adj` as int8 avoids
    extra wrapper-side HBM casting passes; `return_padded=True` returns the
    lane/row-padded (B, Np, Dp) buffer so consumers can fuse the slice.
    """
    B, N, Din = text.shape
    Dout = params["weight"].shape[1]
    Dp = _round_up(Dout, 128)        # lane-dense padded feature dim
    Np = _round_up(N, 16)            # bf16 sublane granularity -> free reshapes

    # Narrow input dtypes (no-op if the caller already supplies them).
    if text.dtype != jnp.bfloat16:
        text = text.astype(jnp.bfloat16)
    if adj.dtype != jnp.int8:
        adj = adj.astype(jnp.int8)   # exact only for 0/1 adjacency

    if Np != N:
        text = jnp.pad(text, ((0, 0), (0, Np - N), (0, 0)))
        adj = jnp.pad(adj, ((0, 0), (0, Np - N), (0, Np - N)))
    text_f = text.reshape(B * Np, Din)

    # Zero-pad feature dim so padded output columns stay exactly 0.
    pad_c = Dp - Dout
    w = jnp.pad(jnp.asarray(params["weight"], jnp.float32),
                ((0, 0), (0, pad_c))).astype(jnp.bfloat16)
    w1 = jnp.pad(jnp.asarray(params["ffn_w1"], jnp.float32),
                 ((0, pad_c), (0, pad_c))).astype(jnp.bfloat16)
    w2 = jnp.pad(jnp.asarray(params["ffn_w2"], jnp.float32),
                 ((0, pad_c), (0, pad_c))).astype(jnp.bfloat16)

    def padvec(v):
        return jnp.pad(jnp.asarray(v, jnp.float32).reshape(1, Dout),
                       ((0, 0), (0, pad_c)))

    # Stack the (1, Dout) vector params (+ column mask) into one (8, Dp) input.
    vec = jnp.concatenate(
        [padvec(params["bias"]), padvec(params["ffn_b1"]),
         padvec(params["ffn_b2"]), padvec(params["ln_gamma"]),
         padvec(params["ln_beta"]),
         padvec(jnp.ones((1, Dout), jnp.float32)),        # col-mask
         jnp.zeros((2, Dp), jnp.float32)], axis=0)

    # Generation-aware VMEM budgeting (v7x: 64 MiB physical, 2 TCs).
    phys_vmem = _tpu_vmem_capacity_bytes()
    is_v7x = phys_vmem <= 64 * 1024 * 1024
    vmem_limit = (48 if is_v7x else 100) * 1024 * 1024
    budget = vmem_limit - 8 * 1024 * 1024                 # compiler headroom

    out_itemsize = jnp.dtype(out_dtype).itemsize
    Bt = _choose_block_batch(B, Np, Din, Dp, out_itemsize, budget,
                             const_bufs=1, require_multi_step=is_v7x)
    G = B // Bt
    M = Bt * Np

    # Reassociate only when it shrinks the batched NxN matmul's output width.
    reassociate = (Din < Dp) and (Dp > 128)

    kernel = functools.partial(gcn_kernel, bt=Bt, n=Np, d_real=float(Dout),
                               reassociate=reassociate)

    def _const_spec(shape, single):
        idx = lambda g, _nd=len(shape): (0,) * _nd
        if single:
            # Grid-invariant operand: single-buffer to save VMEM.
            return pl.BlockSpec(shape, idx, pipeline_mode=pl.Buffered(1))
        return pl.BlockSpec(shape, idx)

    def _run(single_buffer_consts):
        grid_spec = pltpu.PrefetchScalarGridSpec(
            num_scalar_prefetch=0,
            grid=(G,),
            in_specs=[
                pl.BlockSpec((M, Din), lambda g: (g, 0)),          # text (flat)
                pl.BlockSpec((Bt, Np, Np), lambda g: (g, 0, 0)),   # adj int8
                _const_spec((Din, Dp), single_buffer_consts),      # weight
                _const_spec((Dp, Dp), single_buffer_consts),       # ffn w1
                _const_spec((Dp, Dp), single_buffer_consts),       # ffn w2
                _const_spec((8, Dp), single_buffer_consts),        # stacked vecs
            ],
            out_specs=pl.BlockSpec((M, Dp), lambda g: (g, 0)),
        )
        return pl.pallas_call(
            kernel,
            out_shape=jax.ShapeDtypeStruct((B * Np, Dp), out_dtype),
            grid_spec=grid_spec,
            compiler_params=pltpu.CompilerParams(
                dimension_semantics=("parallel",),
                vmem_limit_bytes=vmem_limit),
        )(text_f, adj, w, w1, w2, vec)

    try:
        out = _run(True)       # single-buffered grid-invariant operands
    except Exception:
        out = _run(False)      # fallback if pipeline_mode=Buffered(1) unsupported

    out = out.reshape(B, Np, Dp)
    if return_padded:
        return out
    return out[:, :N, :Dout]


def reference(text, adj, params):
    text = text.astype(jnp.float32)
    adj = adj.astype(jnp.float32)
    hidden = jnp.einsum("bnd,de->bne", text, params["weight"])
    denom = jnp.sum(adj, axis=2, keepdims=True) + 1.0
    gcn = jnp.einsum("bnm,bme->bne", adj, hidden) / denom
    h = jnp.maximum(gcn @ params["ffn_w1"] + params["ffn_b1"], 0.0)
    h = h @ params["ffn_w2"] + params["ffn_b2"]
    y = h + gcn
    mean = jnp.mean(y, axis=-1, keepdims=True)
    var = jnp.mean((y - mean) ** 2, axis=-1, keepdims=True)
    y = (y - mean) / jnp.sqrt(var + 1e-5)
    y = y * params["ln_gamma"] + params["ln_beta"]
    return y + params["bias"]


if __name__ == "__main__":
    # opt.hidden_dim = 16  ->  ffn width = hidden_dim * 2 = 32 == out_features
    B, N = 2, 8
    hidden_dim = 16
    in_features = 2 * hidden_dim   # 32 (e.g. BiLSTM output)
    out_features = 2 * hidden_dim  # 32 (must match ffn_gcn width)

    key = jax.random.PRNGKey(0)
    ks = jax.random.split(key, 10)

    # Inputs supplied directly in the narrow dtypes the kernel consumes, so the
    # wrapper adds no extra HBM casting passes.
    text = jax.random.normal(ks[0], (B, N, in_features),
                             dtype=jnp.float32).astype(jnp.bfloat16)
    adj = (jax.random.uniform(ks[1], (B, N, N)) > 0.5).astype(jnp.int8)

    stdv = 1.0 / (out_features ** 0.5)
    params = {
        "weight": jax.random.uniform(ks[2], (in_features, out_features),
                                     minval=-stdv, maxval=stdv, dtype=jnp.float32),
        "bias": jax.random.uniform(ks[3], (1, out_features),
                                   minval=-stdv, maxval=stdv, dtype=jnp.float32),
        # 1x1 conv weights stored pre-transposed to (in, out) for feature-last matmul
        "ffn_w1": jax.random.normal(ks[4], (out_features, out_features), dtype=jnp.float32) * 0.1,
        "ffn_b1": jax.random.normal(ks[5], (1, out_features), dtype=jnp.float32) * 0.1,
        "ffn_w2": jax.random.normal(ks[6], (out_features, out_features), dtype=jnp.float32) * 0.1,
        "ffn_b2": jax.random.normal(ks[7], (1, out_features), dtype=jnp.float32) * 0.1,
        "ln_gamma": jnp.ones((1, out_features), dtype=jnp.float32),
        "ln_beta": jnp.zeros((1, out_features), dtype=jnp.float32),
    }

    out = graph_convolution(text, adj, params)
    out = jax.block_until_ready(out)
    assert out.shape == (B, N, out_features)

    ref = reference(text, adj, params)
    # bf16-aware error bound (bf16 matmul operands + bf16 output store).
    err = jnp.abs(out.astype(jnp.float32) - ref)
    bound = 3e-2 + 3e-2 * jnp.abs(ref)
    assert bool(jnp.all(err <= bound)), (
        f"max abs err = {float(jnp.max(err))}, "
        f"max rel err = {float(jnp.max(err / (jnp.abs(ref) + 1e-6)))}")

    print("KERNEL_OK")
</pallas_src>

<mosaic_0001>
module attributes {stable_mosaic.version = 11 : i64} {
  func.func @gcn_kernel(%arg0: i32, %arg1: memref<32x32xbf16, #tpu.memory_space<vmem>>, %arg2: memref<2x16x16xi8, #tpu.memory_space<vmem>>, %arg3: memref<32x128xbf16, #tpu.memory_space<vmem>>, %arg4: memref<128x128xbf16, #tpu.memory_space<vmem>>, %arg5: memref<128x128xbf16, #tpu.memory_space<vmem>>, %arg6: memref<8x128xf32, #tpu.memory_space<vmem>>, %arg7: memref<32x128xbf16, #tpu.memory_space<vmem>>) attributes {dimension_semantics = [#tpu.dimension_semantics<parallel>], iteration_bounds = array<i64: 1>, scalar_prefetch = 0 : i64, scratch_operands = 0 : i64, tpu.core_type = #tpu.core_type<tc>, window_params = [{transform_indices = @transform_0, window_bounds = array<i64: 32, 32>}, {transform_indices = @transform_1, window_bounds = array<i64: 2, 16, 16>}, {pipeline_mode = #tpu.pipeline_mode<synchronous>, transform_indices = @transform_2, window_bounds = array<i64: 32, 128>}, {pipeline_mode = #tpu.pipeline_mode<synchronous>, transform_indices = @transform_3, window_bounds = array<i64: 128, 128>}, {pipeline_mode = #tpu.pipeline_mode<synchronous>, transform_indices = @transform_4, window_bounds = array<i64: 128, 128>}, {pipeline_mode = #tpu.pipeline_mode<synchronous>, transform_indices = @transform_5, window_bounds = array<i64: 8, 128>}, {transform_indices = @transform_6, window_bounds = array<i64: 32, 128>}]} {
    %c0 = arith.constant 0 : index
    %c0_0 = arith.constant 0 : index
    %0 = vector.load %arg1[%c0, %c0_0] : memref<32x32xbf16, #tpu.memory_space<vmem>>, vector<32x32xbf16>
    %c0_1 = arith.constant 0 : index
    %c0_2 = arith.constant 0 : index
    %c0_3 = arith.constant 0 : index
    %1 = vector.load %arg2[%c0_1, %c0_2, %c0_3] : memref<2x16x16xi8, #tpu.memory_space<vmem>>, vector<2x16x16xi8>
    %2 = arith.sitofp %1 : vector<2x16x16xi8> to vector<2x16x16xbf16>
    %3 = arith.extf %2 : vector<2x16x16xbf16> to vector<2x16x16xf32>
    %cst = arith.constant dense<0.000000e+00> : vector<2x16xf32>
    %4 = vector.multi_reduction <add>, %3, %cst [2] : vector<2x16x16xf32> to vector<2x16xf32>
    %5 = vector.shape_cast %4 : vector<2x16xf32> to vector<2x16x1xf32>
    %cst_4 = arith.constant 1.000000e+00 : f32
    %6 = vector.broadcast %cst_4 : f32 to vector<2x16x1xf32>
    %7 = arith.addf %5, %6 : vector<2x16x1xf32>
    %cst_5 = arith.constant 1.000000e+00 : f32
    %8 = vector.broadcast %cst_5 : f32 to vector<2x16x1xf32>
    %9 = arith.divf %8, %7 : vector<2x16x1xf32>
    %c0_6 = arith.constant 0 : index
    %c0_7 = arith.constant 0 : index
    %10 = vector.load %arg3[%c0_6, %c0_7] : memref<32x128xbf16, #tpu.memory_space<vmem>>, vector<32x128xbf16>
    %cst_8 = arith.constant dense<0.000000e+00> : vector<32x128xf32>
    %11 = tpu.matmul %0, %10, %cst_8 {dimension_numbers = #tpu.dot_dimension_numbers<[1], [0], [0], [1], [0, 0, 1, 1], [], []>} : vector<32x32xbf16>, vector<32x128xbf16>, vector<32x128xf32> -> vector<32x128xf32>
    %12 = vector.shape_cast %11 : vector<32x128xf32> to vector<2x16x128xf32>
    %13 = arith.truncf %12 : vector<2x16x128xf32> to vector<2x16x128xbf16>
    "tpu.trace_start"() <{level = 10 : i32, message = "bij,bjd->bid"}> : () -> ()
    %cst_9 = arith.constant dense<0.000000e+00> : vector<2x16x128xf32>
    %14 = tpu.matmul %2, %13, %cst_9 {dimension_numbers = #tpu.dot_dimension_numbers<[2], [1], [1], [2], [0, 0, 0, 1, 1, 2], [0], [0]>} : vector<2x16x16xbf16>, vector<2x16x128xbf16>, vector<2x16x128xf32> -> vector<2x16x128xf32>
    "tpu.trace_stop"() : () -> ()
    %15 = vector.broadcast %9 : vector<2x16x1xf32> to vector<2x16x128xf32>
    %16 = arith.mulf %14, %15 : vector<2x16x128xf32>
    %17 = vector.shape_cast %16 : vector<2x16x128xf32> to vector<32x128xf32>
    %c1 = arith.constant 1 : index
    %c0_10 = arith.constant 0 : index
    %18 = vector.load %arg6[%c1, %c0_10] : memref<8x128xf32, #tpu.memory_space<vmem>>, vector<1x128xf32>
    %c2 = arith.constant 2 : index
    %c0_11 = arith.constant 0 : index
    %19 = vector.load %arg6[%c2, %c0_11] : memref<8x128xf32, #tpu.memory_space<vmem>>, vector<1x128xf32>
    %20 = arith.truncf %17 : vector<32x128xf32> to vector<32x128xbf16>
    %c0_12 = arith.constant 0 : index
    %c0_13 = arith.constant 0 : index
    %21 = vector.load %arg4[%c0_12, %c0_13] : memref<128x128xbf16, #tpu.memory_space<vmem>>, vector<128x128xbf16>
    %cst_14 = arith.constant dense<0.000000e+00> : vector<32x128xf32>
    %22 = tpu.matmul %20, %21, %cst_14 {dimension_numbers = #tpu.dot_dimension_numbers<[1], [0], [0], [1], [0, 0, 1, 1], [], []>} : vector<32x128xbf16>, vector<128x128xbf16>, vector<32x128xf32> -> vector<32x128xf32>
    %23 = vector.broadcast %18 : vector<1x128xf32> to vector<32x128xf32>
    %24 = arith.addf %22, %23 : vector<32x128xf32>
    %cst_15 = arith.constant 0.000000e+00 : f32
    %25 = vector.broadcast %cst_15 : f32 to vector<32x128xf32>
    %26 = arith.maximumf %24, %25 : vector<32x128xf32>
    %27 = arith.truncf %26 : vector<32x128xf32> to vector<32x128xbf16>
    %c0_16 = arith.constant 0 : index
    %c0_17 = arith.constant 0 : index
    %28 = vector.load %arg5[%c0_16, %c0_17] : memref<128x128xbf16, #tpu.memory_space<vmem>>, vector<128x128xbf16>
    %cst_18 = arith.constant dense<0.000000e+00> : vector<32x128xf32>
    %29 = tpu.matmul %27, %28, %cst_18 {dimension_numbers = #tpu.dot_dimension_numbers<[1], [0], [0], [1], [0, 0, 1, 1], [], []>} : vector<32x128xbf16>, vector<128x128xbf16>, vector<32x128xf32> -> vector<32x128xf32>
    %30 = vector.broadcast %19 : vector<1x128xf32> to vector<32x128xf32>
    %31 = arith.addf %29, %30 : vector<32x128xf32>
    %32 = arith.addf %31, %17 : vector<32x128xf32>
    %c5 = arith.constant 5 : index
    %c0_19 = arith.constant 0 : index
    %33 = vector.load %arg6[%c5, %c0_19] : memref<8x128xf32, #tpu.memory_space<vmem>>, vector<1x128xf32>
    %cst_20 = arith.constant dense<0.000000e+00> : vector<32xf32>
    %34 = vector.multi_reduction <add>, %32, %cst_20 [1] : vector<32x128xf32> to vector<32xf32>
    %35 = vector.shape_cast %34 : vector<32xf32> to vector<32x1xf32>
    %cst_21 = arith.constant 3.125000e-02 : f32
    %36 = vector.broadcast %cst_21 : f32 to vector<32x1xf32>
    %37 = arith.mulf %35, %36 : vector<32x1xf32>
    %38 = vector.broadcast %37 : vector<32x1xf32> to vector<32x128xf32>
    %39 = arith.subf %32, %38 : vector<32x128xf32>
    %40 = vector.broadcast %33 : vector<1x128xf32> to vector<32x128xf32>
    %41 = arith.mulf %39, %40 : vector<32x128xf32>
    %42 = arith.mulf %41, %41 : vector<32x128xf32>
    %cst_22 = arith.constant dense<0.000000e+00> : vector<32xf32>
    %43 = vector.multi_reduction <add>, %42, %cst_22 [1] : vector<32x128xf32> to vector<32xf32>
    %44 = vector.shape_cast %43 : vector<32xf32> to vector<32x1xf32>
    %cst_23 = arith.constant 3.125000e-02 : f32
    %45 = vector.broadcast %cst_23 : f32 to vector<32x1xf32>
    %46 = arith.mulf %44, %45 : vector<32x1xf32>
    %cst_24 = arith.constant 9.99999974E-6 : f32
    %47 = vector.broadcast %cst_24 : f32 to vector<32x1xf32>
    %48 = arith.addf %46, %47 : vector<32x1xf32>
    %49 = math.rsqrt %48 : vector<32x1xf32>
    %50 = vector.broadcast %49 : vector<32x1xf32> to vector<32x128xf32>
    %51 = arith.mulf %41, %50 : vector<32x128xf32>
    %c3 = arith.constant 3 : index
    %c0_25 = arith.constant 0 : index
    %52 = vector.load %arg6[%c3, %c0_25] : memref<8x128xf32, #tpu.memory_space<vmem>>, vector<1x128xf32>
    %53 = vector.broadcast %52 : vector<1x128xf32> to vector<32x128xf32>
    %54 = arith.mulf %51, %53 : vector<32x128xf32>
    %c4 = arith.constant 4 : index
    %c0_26 = arith.constant 0 : index
    %55 = vector.load %arg6[%c4, %c0_26] : memref<8x128xf32, #tpu.memory_space<vmem>>, vector<1x128xf32>
    %56 = vector.broadcast %55 : vector<1x128xf32> to vector<32x128xf32>
    %57 = arith.addf %54, %56 : vector<32x128xf32>
    %c0_27 = arith.constant 0 : index
    %c0_28 = arith.constant 0 : index
    %58 = vector.load %arg6[%c0_27, %c0_28] : memref<8x128xf32, #tpu.memory_space<vmem>>, vector<1x128xf32>
    %59 = vector.broadcast %58 : vector<1x128xf32> to vector<32x128xf32>
    %60 = arith.addf %57, %59 : vector<32x128xf32>
    %61 = arith.truncf %60 : vector<32x128xf32> to vector<32x128xbf16>
    %c0_29 = arith.constant 0 : index
    %c0_30 = arith.constant 0 : index
    %62 = vector.load %arg7[%c0_29, %c0_30] : memref<32x128xbf16, #tpu.memory_space<vmem>>, vector<32x128xbf16>
    tpu.vector_store %arg7[%c0_29, %c0_30], %61 {strides = array<i32>} : memref<32x128xbf16, #tpu.memory_space<vmem>>, vector<32x128xbf16>,
    return
  }
  func.func @transform_0(%arg0: i32) -> (i32, i32) {
    %c0_i32 = arith.constant 0 : i32
    %c0_i32_0 = arith.constant 0 : i32
    return %arg0, %c0_i32 : i32, i32
  }
  func.func @transform_1(%arg0: i32) -> (i32, i32, i32) {
    %c0_i32 = arith.constant 0 : i32
    %c0_i32_0 = arith.constant 0 : i32
    %c0_i32_1 = arith.constant 0 : i32
    return %arg0, %c0_i32, %c0_i32_0 : i32, i32, i32
  }
  func.func @transform_2(%arg0: i32) -> (i32, i32) {
    %c0_i32 = arith.constant 0 : i32
    %c0_i32_0 = arith.constant 0 : i32
    %c0_i32_1 = arith.constant 0 : i32
    return %c0_i32, %c0_i32_0 : i32, i32
  }
  func.func @transform_3(%arg0: i32) -> (i32, i32) {
    %c0_i32 = arith.constant 0 : i32
    %c0_i32_0 = arith.constant 0 : i32
    %c0_i32_1 = arith.constant 0 : i32
    return %c0_i32, %c0_i32_0 : i32, i32
  }
  func.func @transform_4(%arg0: i32) -> (i32, i32) {
    %c0_i32 = arith.constant 0 : i32
    %c0_i32_0 = arith.constant 0 : i32
    %c0_i32_1 = arith.constant 0 : i32
    return %c0_i32, %c0_i32_0 : i32, i32
  }
  func.func @transform_5(%arg0: i32) -> (i32, i32) {
    %c0_i32 = arith.constant 0 : i32
    %c0_i32_0 = arith.constant 0 : i32
    %c0_i32_1 = arith.constant 0 : i32
    return %c0_i32, %c0_i32_0 : i32, i32
  }
  func.func @transform_6(%arg0: i32) -> (i32, i32) {
    %c0_i32 = arith.constant 0 : i32
    %c0_i32_0 = arith.constant 0 : i32
    return %arg0, %c0_i32 : i32, i32
  }
}

module attributes {stable_mosaic.version = 11 : i64} {
  func.func @gcn_kernel(%arg0: i32, %arg1: memref<32x32xbf16, #tpu.memory_space<vmem>>, %arg2: memref<2x16x16xi8, #tpu.memory_space<vmem>>, %arg3: memref<32x128xbf16, #tpu.memory_space<vmem>>, %arg4: memref<128x128xbf16, #tpu.memory_space<vmem>>, %arg5: memref<128x128xbf16, #tpu.memory_space<vmem>>, %arg6: memref<8x128xf32, #tpu.memory_space<vmem>>, %arg7: memref<32x128xbf16, #tpu.memory_space<vmem>>) attributes {dimension_semantics = [#tpu.dimension_semantics<parallel>], iteration_bounds = array<i64: 1>, scalar_prefetch = 0 : i64, scratch_operands = 0 : i64, tpu.core_type = #tpu.core_type<tc>, window_params = [{transform_indices = @transform_0, window_bounds = array<i64: 32, 32>}, {transform_indices = @transform_1, window_bounds = array<i64: 2, 16, 16>}, {pipeline_mode = #tpu.pipeline_mode<synchronous>, transform_indices = @transform_2, window_bounds = array<i64: 32, 128>}, {pipeline_mode = #tpu.pipeline_mode<synchronous>, transform_indices = @transform_3, window_bounds = array<i64: 128, 128>}, {pipeline_mode = #tpu.pipeline_mode<synchronous>, transform_indices = @transform_4, window_bounds = array<i64: 128, 128>}, {pipeline_mode = #tpu.pipeline_mode<synchronous>, transform_indices = @transform_5, window_bounds = array<i64: 8, 128>}, {transform_indices = @transform_6, window_bounds = array<i64: 32, 128>}]} {
    %c0 = arith.constant 0 : index
    %c0_0 = arith.constant 0 : index
    %0 = vector.load %arg1[%c0, %c0_0] : memref<32x32xbf16, #tpu.memory_space<vmem>>, vector<32x32xbf16>
    %c0_1 = arith.constant 0 : index
    %c0_2 = arith.constant 0 : index
    %c0_3 = arith.constant 0 : index
    %1 = vector.load %arg2[%c0_1, %c0_2, %c0_3] : memref<2x16x16xi8, #tpu.memory_space<vmem>>, vector<2x16x16xi8>
    %2 = arith.sitofp %1 : vector<2x16x16xi8> to vector<2x16x16xbf16>
    %3 = arith.extf %2 : vector<2x16x16xbf16> to vector<2x16x16xf32>
    %cst = arith.constant dense<0.000000e+00> : vector<2x16xf32>
    %4 = vector.multi_reduction <add>, %3, %cst [2] : vector<2x16x16xf32> to vector<2x16xf32>
    %5 = vector.shape_cast %4 : vector<2x16xf32> to vector<2x16x1xf32>
    %cst_4 = arith.constant 1.000000e+00 : f32
    %6 = vector.broadcast %cst_4 : f32 to vector<2x16x1xf32>
    %7 = arith.addf %5, %6 : vector<2x16x1xf32>
    %cst_5 = arith.constant 1.000000e+00 : f32
    %8 = vector.broadcast %cst_5 : f32 to vector<2x16x1xf32>
    %9 = arith.divf %8, %7 : vector<2x16x1xf32>
    %c0_6 = arith.constant 0 : index
    %c0_7 = arith.constant 0 : index
    %10 = vector.load %arg3[%c0_6, %c0_7] : memref<32x128xbf16, #tpu.memory_space<vmem>>, vector<32x128xbf16>
    %cst_8 = arith.constant dense<0.000000e+00> : vector<32x128xf32>
    %11 = tpu.matmul %0, %10, %cst_8 {dimension_numbers = #tpu.dot_dimension_numbers<[1], [0], [0], [1], [0, 0, 1, 1], [], []>} : vector<32x32xbf16>, vector<32x128xbf16>, vector<32x128xf32> -> vector<32x128xf32>
    %12 = vector.shape_cast %11 : vector<32x128xf32> to vector<2x16x128xf32>
    %13 = arith.truncf %12 : vector<2x16x128xf32> to vector<2x16x128xbf16>
    "tpu.trace_start"() <{level = 10 : i32, message = "bij,bjd->bid"}> : () -> ()
    %cst_9 = arith.constant dense<0.000000e+00> : vector<2x16x128xf32>
    %14 = tpu.matmul %2, %13, %cst_9 {dimension_numbers = #tpu.dot_dimension_numbers<[2], [1], [1], [2], [0, 0, 0, 1, 1, 2], [0], [0]>} : vector<2x16x16xbf16>, vector<2x16x128xbf16>, vector<2x16x128xf32> -> vector<2x16x128xf32>
    "tpu.trace_stop"() : () -> ()
    %15 = vector.broadcast %9 : vector<2x16x1xf32> to vector<2x16x128xf32>
    %16 = arith.mulf %14, %15 : vector<2x16x128xf32>
    %17 = vector.shape_cast %16 : vector<2x16x128xf32> to vector<32x128xf32>
    %c1 = arith.constant 1 : index
    %c0_10 = arith.constant 0 : index
    %18 = vector.load %arg6[%c1, %c0_10] : memref<8x128xf32, #tpu.memory_space<vmem>>, vector<1x128xf32>
    %c2 = arith.constant 2 : index
    %c0_11 = arith.constant 0 : index
    %19 = vector.load %arg6[%c2, %c0_11] : memref<8x128xf32, #tpu.memory_space<vmem>>, vector<1x128xf32>
    %20 = arith.truncf %17 : vector<32x128xf32> to vector<32x128xbf16>
    %c0_12 = arith.constant 0 : index
    %c0_13 = arith.constant 0 : index
    %21 = vector.load %arg4[%c0_12, %c0_13] : memref<128x128xbf16, #tpu.memory_space<vmem>>, vector<128x128xbf16>
    %cst_14 = arith.constant dense<0.000000e+00> : vector<32x128xf32>
    %22 = tpu.matmul %20, %21, %cst_14 {dimension_numbers = #tpu.dot_dimension_numbers<[1], [0], [0], [1], [0, 0, 1, 1], [], []>} : vector<32x128xbf16>, vector<128x128xbf16>, vector<32x128xf32> -> vector<32x128xf32>
    %23 = vector.broadcast %18 : vector<1x128xf32> to vector<32x128xf32>
    %24 = arith.addf %22, %23 : vector<32x128xf32>
    %cst_15 = arith.constant 0.000000e+00 : f32
    %25 = vector.broadcast %cst_15 : f32 to vector<32x128xf32>
    %26 = arith.maximumf %24, %25 : vector<32x128xf32>
    %27 = arith.truncf %26 : vector<32x128xf32> to vector<32x128xbf16>
    %c0_16 = arith.constant 0 : index
    %c0_17 = arith.constant 0 : index
    %28 = vector.load %arg5[%c0_16, %c0_17] : memref<128x128xbf16, #tpu.memory_space<vmem>>, vector<128x128xbf16>
    %cst_18 = arith.constant dense<0.000000e+00> : vector<32x128xf32>
    %29 = tpu.matmul %27, %28, %cst_18 {dimension_numbers = #tpu.dot_dimension_numbers<[1], [0], [0], [1], [0, 0, 1, 1], [], []>} : vector<32x128xbf16>, vector<128x128xbf16>, vector<32x128xf32> -> vector<32x128xf32>
    %30 = vector.broadcast %19 : vector<1x128xf32> to vector<32x128xf32>
    %31 = arith.addf %29, %30 : vector<32x128xf32>
    %32 = arith.addf %31, %17 : vector<32x128xf32>
    %c5 = arith.constant 5 : index
    %c0_19 = arith.constant 0 : index
    %33 = vector.load %arg6[%c5, %c0_19] : memref<8x128xf32, #tpu.memory_space<vmem>>, vector<1x128xf32>
    %cst_20 = arith.constant dense<0.000000e+00> : vector<32xf32>
    %34 = vector.multi_reduction <add>, %32, %cst_20 [1] : vector<32x128xf32> to vector<32xf32>
    %35 = vector.shape_cast %34 : vector<32xf32> to vector<32x1xf32>
    %cst_21 = arith.constant 3.125000e-02 : f32
    %36 = vector.broadcast %cst_21 : f32 to vector<32x1xf32>
    %37 = arith.mulf %35, %36 : vector<32x1xf32>
    %38 = vector.broadcast %37 : vector<32x1xf32> to vector<32x128xf32>
    %39 = arith.subf %32, %38 : vector<32x128xf32>
    %40 = vector.broadcast %33 : vector<1x128xf32> to vector<32x128xf32>
    %41 = arith.mulf %39, %40 : vector<32x128xf32>
    %42 = arith.mulf %41, %41 : vector<32x128xf32>
    %cst_22 = arith.constant dense<0.000000e+00> : vector<32xf32>
    %43 = vector.multi_reduction <add>, %42, %cst_22 [1] : vector<32x128xf32> to vector<32xf32>
    %44 = vector.shape_cast %43 : vector<32xf32> to vector<32x1xf32>
    %cst_23 = arith.constant 3.125000e-02 : f32
    %45 = vector.broadcast %cst_23 : f32 to vector<32x1xf32>
    %46 = arith.mulf %44, %45 : vector<32x1xf32>
    %cst_24 = arith.constant 9.99999974E-6 : f32
    %47 = vector.broadcast %cst_24 : f32 to vector<32x1xf32>
    %48 = arith.addf %46, %47 : vector<32x1xf32>
    %49 = math.rsqrt %48 : vector<32x1xf32>
    %50 = vector.broadcast %49 : vector<32x1xf32> to vector<32x128xf32>
    %51 = arith.mulf %41, %50 : vector<32x128xf32>
    %c3 = arith.constant 3 : index
    %c0_25 = arith.constant 0 : index
    %52 = vector.load %arg6[%c3, %c0_25] : memref<8x128xf32, #tpu.memory_space<vmem>>, vector<1x128xf32>
    %53 = vector.broadcast %52 : vector<1x128xf32> to vector<32x128xf32>
    %54 = arith.mulf %51, %53 : vector<32x128xf32>
    %c4 = arith.constant 4 : index
    %c0_26 = arith.constant 0 : index
    %55 = vector.load %arg6[%c4, %c0_26] : memref<8x128xf32, #tpu.memory_space<vmem>>, vector<1x128xf32>
    %56 = vector.broadcast %55 : vector<1x128xf32> to vector<32x128xf32>
    %57 = arith.addf %54, %56 : vector<32x128xf32>
    %c0_27 = arith.constant 0 : index
    %c0_28 = arith.constant 0 : index
    %58 = vector.load %arg6[%c0_27, %c0_28] : memref<8x128xf32, #tpu.memory_space<vmem>>, vector<1x128xf32>
    %59 = vector.broadcast %58 : vector<1x128xf32> to vector<32x128xf32>
    %60 = arith.addf %57, %59 : vector<32x128xf32>
    %61 = arith.truncf %60 : vector<32x128xf32> to vector<32x128xbf16>
    %c0_29 = arith.constant 0 : index
    %c0_30 = arith.constant 0 : index
    %62 = vector.load %arg7[%c0_29, %c0_30] : memref<32x128xbf16, #tpu.memory_space<vmem>>, vector<32x128xbf16>
    tpu.vector_store %arg7[%c0_29, %c0_30], %61 {strides = array<i32>} : memref<32x128xbf16, #tpu.memory_space<vmem>>, vector<32x128xbf16>,
    return
  }
  func.func @transform_0(%arg0: i32) -> (i32, i32) {
    %c0_i32 = arith.constant 0 : i32
    %c0_i32_0 = arith.constant 0 : i32
    return %arg0, %c0_i32 : i32, i32
  }
  func.func @transform_1(%arg0: i32) -> (i32, i32, i32) {
    %c0_i32 = arith.constant 0 : i32
    %c0_i32_0 = arith.constant 0 : i32
    %c0_i32_1 = arith.constant 0 : i32
    return %arg0, %c0_i32, %c0_i32_0 : i32, i32, i32
  }
  func.func @transform_2(%arg0: i32) -> (i32, i32) {
    %c0_i32 = arith.constant 0 : i32
    %c0_i32_0 = arith.constant 0 : i32
    %c0_i32_1 = arith.constant 0 : i32
    return %c0_i32, %c0_i32_0 : i32, i32
  }
  func.func @transform_3(%arg0: i32) -> (i32, i32) {
    %c0_i32 = arith.constant 0 : i32
    %c0_i32_0 = arith.constant 0 : i32
    %c0_i32_1 = arith.constant 0 : i32
    return %c0_i32, %c0_i32_0 : i32, i32
  }
  func.func @transform_4(%arg0: i32) -> (i32, i32) {
    %c0_i32 = arith.constant 0 : i32
    %c0_i32_0 = arith.constant 0 : i32
    %c0_i32_1 = arith.constant 0 : i32
    return %c0_i32, %c0_i32_0 : i32, i32
  }
  func.func @transform_5(%arg0: i32) -> (i32, i32) {
    %c0_i32 = arith.constant 0 : i32
    %c0_i32_0 = arith.constant 0 : i32
    %c0_i32_1 = arith.constant 0 : i32
    return %c0_i32, %c0_i32_0 : i32, i32
  }
  func.func @transform_6(%arg0: i32) -> (i32, i32) {
    %c0_i32 = arith.constant 0 : i32
    %c0_i32_0 = arith.constant 0 : i32
    return %arg0, %c0_i32 : i32, i32
  }
}

</mosaic_0001>

<bundles_post_ra>
// kernel: tpu_custom_call.1
= control target key start
LH: loop header
LB: loop body
LE: loop exit
PB: predicated region body
PF: predicated region fallthrough
CT: control target
= control target key end

     0   :  { %11 = vsyncpa [#allocation3], 0  ;;  %s1207_s0 = inlined_call_operand.hbm [shape: bf16[32,32], index: 0, kind: input, shape index: {}]   ;;  %s1208_s1 = inlined_call_operand.hbm [shape: s8[2,16,16], index: 1, kind: input, shape index: {}]   ;;  %s1209_s2 = inlined_call_operand.hbm [shape: bf16[32,128], index: 2, kind: input, shape index: {}]   ;;  %s1210_s3 = inlined_call_operand.hbm [shape: bf16[128,128], index: 3, kind: input, shape index: {}]   ;;  %s1211_s4 = inlined_call_operand.hbm [shape: bf16[128,128], index: 4, kind: input, shape index: {}]   ;;  %s1212_s5 = inlined_call_operand.hbm [shape: f32[8,128], index: 5, kind: input, shape index: {}]   ;;  %s1213_s6 = inlined_call_operand.hbm [shape: bf16[32,128], index: 6, kind: output, shape index: {}]  }
   0x1   :  { %12 = vsyncpa [#allocation6], 0 }
   0x2   :  { %13 = vsyncpa [#allocation9], 0 }
   0x3   :  { %14 = vsyncpa [#allocation12], 0 }
   0x4   :  { %15 = vsyncpa [#allocation4], 0  ;;  %s1052_s21 = smov [#allocation5]   ;;  %s888_s25 = scalar_lea.hbm %s1208_s1, 128 }
   0x5   :  { %s33_s22 = sshll.u32 %s1052_s21, 4  ;;  %p889_p0 = scmp.ne.s32.totalorder %s1208_s1, %s888_s25  ;;  %s34_s22 = int_to_ptr.vmem [resolvable:$true] %s33_s22 }
   0x6   :  { %p892_p1 = scmp.lt.u32.totalorder %s888_s25, %s1208_s1 }
   0x8   :  { %p894_p2 = pnand %p892_p1, %p889_p0 }
   0xa   :  { %897 = shalt.err (!%p894_p2)
}
   0xb   :  { %s898_s30 = scalar_lea.vmem %s34_s22, 128  ;;  %p903_p4 = scmp.lt.s32.totalorder %s34_s22, %s34_s22 }
   0xc   :  { %p899_p3 = scmp.ne.s32.totalorder %s34_s22, %s898_s30  ;;  %p904_p5 = scmp.lt.s32.totalorder %s898_s30, %s898_s30 }
   0xe   :  { %p905_p6 = por %p904_p5, %p903_p4 }
  0x10   :  { %p906_p7 = pnand %p905_p6, %p899_p3 }
  0x12   :  { %909 = shalt.err (!%p906_p7)
}
  0x13   :  { %s1053_s7 = smov 32   ;;  %s1054_s8 = smov 2  }
  0x14   :  { %39 = dma.hbm_to_vmem [thread:$0]  %s1208_s1, 128, %s34_s22, [#allocation6], %s1053_s7, %s1053_s7, %s1054_s8  }
  0x15   :  { %s1055_s11 = smov [#allocation8]   ;;  %s1056_s13 = smov [#allocation2]  }
  0x16   :  { %s57_s12 = sshll.u32 %s1055_s11, 4  ;;  %s21_s14 = sshll.u32 %s1056_s13, 4  ;;  %s58_s12 = int_to_ptr.vmem [resolvable:$true] %s57_s12  ;;  %s22_s14 = int_to_ptr.vmem [resolvable:$true] %s21_s14 }
  0x17   :  { %s910_s17 = scalar_lea.hbm %s1210_s3, 1024 }
  0x18   :  { %p911_p8 = scmp.ne.s32.totalorder %s1210_s3, %s910_s17  ;;  %p914_p9 = scmp.lt.u32.totalorder %s910_s17, %s1210_s3 }
  0x1a   :  { %p916_p10 = pnand %p914_p9, %p911_p8 }
  0x1c   :  { %919 = shalt.err (!%p916_p10)
}
  0x1d   :  { %s920_s1 = scalar_lea.vmem %s58_s12, 1024  ;;  %p925_p12 = scmp.lt.s32.totalorder %s58_s12, %s58_s12 }
  0x1e   :  { %p921_p11 = scmp.ne.s32.totalorder %s58_s12, %s920_s1  ;;  %p926_p13 = scmp.lt.s32.totalorder %s920_s1, %s920_s1 }
  0x20   :  { %p927_p0 = por %p926_p13, %p925_p12 }
  0x22   :  { %p928_p1 = pnand %p927_p0, %p921_p11 }
  0x24   :  { %931 = shalt.err (!%p928_p1)
}
  0x25   :  { %s1057_s22 = smov 64   ;;  %s1058_s23 = smov 4  }
  0x26   :  { %63 = dma.hbm_to_vmem [thread:$0]  %s1210_s3, 1024, %s58_s12, [#allocation9], %s1057_s22, %s1057_s22, %s1058_s23  }
  0x27   :  { %s932_s28 = scalar_lea.hbm %s1207_s0, 256 }
  0x28   :  { %p933_p2 = scmp.ne.s32.totalorder %s1207_s0, %s932_s28  ;;  %p936_p3 = scmp.lt.u32.totalorder %s932_s28, %s1207_s0 }
  0x2a   :  { %p938_p4 = pnand %p936_p3, %p933_p2 }
  0x2c   :  { %941 = shalt.err (!%p938_p4)
}
  0x2d   :  { %s942_s9 = scalar_lea.vmem %s22_s14, 256  ;;  %p947_p6 = scmp.lt.s32.totalorder %s22_s14, %s22_s14 }
  0x2e   :  { %p943_p5 = scmp.ne.s32.totalorder %s22_s14, %s942_s9  ;;  %p948_p7 = scmp.lt.s32.totalorder %s942_s9, %s942_s9 }
  0x30   :  { %p949_p8 = por %p948_p7, %p947_p6 }
  0x32   :  { %p950_p9 = pnand %p949_p8, %p943_p5 }
  0x34   :  { %953 = shalt.err (!%p950_p9)
}
  0x35   :  { %27 = dma.hbm_to_vmem [thread:$0]  %s1207_s0, 256, %s22_s14, [#allocation3], %s1057_s22, %s1057_s22, %s1058_s23  }
  0x36   :  { %s1059_s11 = smov [#allocation7]   ;;  %s1060_s13 = smov [#allocation10]  }
  0x37   :  { %s45_s12 = sshll.u32 %s1059_s11, 4  ;;  %s69_s15 = sshll.u32 %s1060_s13, 4  ;;  %s46_s12 = int_to_ptr.vmem [resolvable:$true] %s45_s12  ;;  %s70_s15 = int_to_ptr.vmem [resolvable:$true] %s69_s15 }
  0x38   :  { %s954_s18 = scalar_lea.hbm %s1209_s2, 256 }
  0x39   :  { %p955_p10 = scmp.ne.s32.totalorder %s1209_s2, %s954_s18  ;;  %p958_p11 = scmp.lt.u32.totalorder %s954_s18, %s1209_s2 }
  0x3b   :  { %p960_p12 = pnand %p958_p11, %p955_p10 }
  0x3d   :  { %963 = shalt.err (!%p960_p12)
}
  0x3e   :  { %s964_s0 = scalar_lea.vmem %s46_s12, 256  ;;  %p969_p0 = scmp.lt.s32.totalorder %s46_s12, %s46_s12 }
  0x3f   :  { %p965_p13 = scmp.ne.s32.totalorder %s46_s12, %s964_s0  ;;  %p970_p1 = scmp.lt.s32.totalorder %s964_s0, %s964_s0 }
  0x41   :  { %p971_p2 = por %p970_p1, %p969_p0 }
  0x43   :  { %p972_p3 = pnand %p971_p2, %p965_p13 }
  0x45   :  { %975 = shalt.err (!%p972_p3)
}
  0x46   :  { %51 = dma.hbm_to_vmem [thread:$0]  %s1209_s2, 256, %s46_s12, [#allocation6], %s1057_s22, %s1057_s22, %s1058_s23  }
  0x47   :  { %s976_s27 = scalar_lea.hbm %s1211_s4, 1024 }
  0x48   :  { %p977_p4 = scmp.ne.s32.totalorder %s1211_s4, %s976_s27  ;;  %p980_p5 = scmp.lt.u32.totalorder %s976_s27, %s1211_s4 }
  0x4a   :  { %p982_p6 = pnand %p980_p5, %p977_p4 }
  0x4c   :  { %985 = shalt.err (!%p982_p6)
}
  0x4d   :  { %s986_s8 = scalar_lea.vmem %s70_s15, 1024  ;;  %p991_p8 = scmp.lt.s32.totalorder %s70_s15, %s70_s15 }
  0x4e   :  { %p987_p7 = scmp.ne.s32.totalorder %s70_s15, %s986_s8  ;;  %p992_p9 = scmp.lt.s32.totalorder %s986_s8, %s986_s8 }
  0x50   :  { %p993_p10 = por %p992_p9, %p991_p8 }
  0x52   :  { %p994_p11 = pnand %p993_p10, %p987_p7 }
  0x54   :  { %997 = shalt.err (!%p994_p11)
}
  0x55   :  { %75 = dma.hbm_to_vmem [thread:$0]  %s1211_s4, 1024, %s70_s15, [#allocation9], %s1057_s22, %s1057_s22, %s1058_s23  }
  0x56   :  { %s1061_s3 = smov [#allocation11]   ;;  %s998_s13 = scalar_lea.hbm %s1212_s5, 128 }
  0x57   :  { %s82_s10 = sshll.u32 %s1061_s3, 4  ;;  %p999_p12 = scmp.ne.s32.totalorder %s1212_s5, %s998_s13  ;;  %s83_s10 = int_to_ptr.vmem [resolvable:$true] %s82_s10 }
  0x58   :  { %p1002_p13 = scmp.lt.u32.totalorder %s998_s13, %s1212_s5 }
  0x5a   :  { %p1004_p0 = pnand %p1002_p13, %p999_p12 }
  0x5c   :  { %1007 = shalt.err (!%p1004_p0)
}
  0x5d   :  { %s1008_s20 = scalar_lea.vmem %s83_s10, 128  ;;  %p1013_p2 = scmp.lt.s32.totalorder %s83_s10, %s83_s10 }
  0x5e   :  { %p1009_p1 = scmp.ne.s32.totalorder %s83_s10, %s1008_s20  ;;  %p1014_p3 = scmp.lt.s32.totalorder %s1008_s20, %s1008_s20 }
  0x60   :  { %p1015_p4 = por %p1014_p3, %p1013_p2 }
  0x62   :  { %p1016_p5 = pnand %p1015_p4, %p1009_p1 }
  0x64   :  { %1019 = shalt.err (!%p1016_p5)
}
  0x65   :  { %85 = dma.hbm_to_vmem [thread:$0]  %s1212_s5, 128, %s83_s10, [#allocation12]  }
  0x66   :  { %1042 = dma.done.wait [#allocation3], 256  }
  0x67   :  { %1043 = vsyncadd [#allocation3], 4294967040 }
  0x68   :  { %1044 = dma.done.wait [#allocation6], 384  }
  0x69   :  { %1045 = vsyncadd [#allocation6], 4294966912 }
  0x6a   :  { %1046 = dma.done.wait [#allocation9], 2048  }
  0x6b   :  { %1047 = vsyncadd [#allocation9], 4294965248 }
  0x6c   :  { %1048 = dma.done.wait [#allocation12], 128  }
  0x6d   :  { %1049 = vsyncadd [#allocation12], 4294967168  ;;  %v852_v0 = vld [vmem:[#allocation7] sm:$0xff]   ;;  %v853_v1 = vld [vmem:[#allocation7 + $0x8] sm:$0xff]   ;;  %vm172_vm0 = vcmask 261120   ;;  %v1062_v6 = vmov 0.0  }
  0x6e   :  { %779 = vmatprep.subr.bf16.mxu0 %v852_v0  ;;  %v854_v2 = vld [vmem:[#allocation2] sm:$0xff]   ;;  %v855_v3 = vld [vmem:[#allocation2 + $0x8] sm:$0xff]   ;;  %v109_v4 = vld [vmem:[#allocation5] sm:$0x3]  ;;  %787 = vmatprep.subr.bf16.mxu1 %v1062_v6  ;;  %vm1063_vm1 = vmmov 0   ;;  %vm121_vm2 = vcmask 130048  }
  0x6f   :  { %780 = vmatpush3.bf16.msra.mxu0 %v852_v0  ;;  %783 = vmatprep.mubr.msk.bf16.mxu0 %vm172_vm0, %v854_v2  ;;  %v110_v5 = vld [vmem:[#allocation5 + $0x2] sm:$0x3]  ;;  %v113_v7 = vunpack.c.l.s8.bf16 %v109_v4  ;;  %v111_v10 = vld [vmem:[#allocation5 + $0x4] sm:$0x3]  ;;  %v112_v11 = vld [vmem:[#allocation5 + $0x6] sm:$0x3] }
  0x70   :  { %781 = vmatprep.subr.bf16.mxu0 %v853_v1  ;;  %v114_v8 = vunpack.c.l.s8.bf16 %v110_v5  ;;  %789 = vmatprep.mubr.msk.bf16.mxu1 %vm1063_vm1, %v1062_v6  ;;  %v115_v12 = vunpack.c.l.s8.bf16 %v111_v10  ;;  %v116_v13 = vunpack.c.l.s8.bf16 %v112_v11  ;;  %v856_v19 = vld [vmem:[#allocation8] sm:$0xff]   ;;  %v857_v24 = vld [vmem:[#allocation8 + $0x8] sm:$0xff]   ;;  %v858_v25 = vld [vmem:[#allocation8 + $0x10] sm:$0xff]   ;;  %s1064_s5 = smov [#allocation13]  }
  0x71   :  { %v117_v15 = vunpack.c.l.bf16 %v113_v7  ;;  %v859_v26 = vld [vmem:[#allocation8 + $0x18] sm:$0xff]   ;;  %v860_v27 = vld [vmem:[#allocation8 + $0x20] sm:$0xff]   ;;  %v861_v34 = vld [vmem:[#allocation8 + $0x28] sm:$0xff]   ;;  %s685_s21 = sshll.u32 %s1064_s5, 4  ;;  %s686_s21 = int_to_ptr.vmem [resolvable:$true] %s685_s21 }
  0x72   :  { %v706_v9 = vcombine.low %v113_v7, %v114_v8  ;;  %v708_v14 = vcombine.low %v115_v12, %v116_v13  ;;  %v118_v16 = vunpack.c.l.bf16 %v114_v8  ;;  %v119_v17 = vunpack.c.l.bf16 %v115_v12  ;;  %v862_v35 = vld [vmem:[#allocation8 + $0x30] sm:$0xff]   ;;  %v863_v36 = vld [vmem:[#allocation8 + $0x38] sm:$0xff]   ;;  %v864_v37 = vld [vmem:[#allocation10] sm:$0xff]   ;;  %s1020_s1 = scalar_lea.vmem %s686_s21, 256  ;;  %p1025_p7 = scmp.lt.s32.totalorder %s686_s21, %s686_s21 }
  0x73   :  { %782 = vmatpush3.bf16.msra.mxu0 %v853_v1  ;;  %v120_v18 = vunpack.c.l.bf16 %v116_v13  ;;  %v122_v20 = vsel %vm121_vm2, %v117_v15, 0.0  ;;  %v865_v38 = vld [vmem:[#allocation10 + $0x8] sm:$0xff]   ;;  %v866_v39 = vld [vmem:[#allocation10 + $0x10] sm:$0xff]   ;;  %v867_v40 = vld [vmem:[#allocation10 + $0x18] sm:$0xff]   ;;  %p1021_p6 = scmp.ne.s32.totalorder %s686_s21, %s1020_s1  ;;  %p1026_p8 = scmp.lt.s32.totalorder %s1020_s1, %s1020_s1 }
  0x74   :  { %v128_v21 = vsel %vm121_vm2, %v119_v17, 0.0  ;;  %799 = vmatprep.subr.bf16.mxu0 %v856_v19  ;;  %123 = vadd.xlane.f32.xlu0 %v122_v20  ;;  %v125_v22 = vsel %vm121_vm2, %v118_v16, 0.0  ;;  %v868_v41 = vld [vmem:[#allocation10 + $0x20] sm:$0xff]   ;;  %v869_v42 = vld [vmem:[#allocation10 + $0x28] sm:$0xff]   ;;  %v870_v5 = vld [vmem:[#allocation10 + $0x30] sm:$0xff]  }
  0x75   :  { %129 = vadd.xlane.f32.xlu1 %v128_v21  ;;  %v131_v23 = vsel %vm121_vm2, %v120_v18, 0.0  ;;  %v710_v7 = vld [vmem:[#allocation11 + $0x1] ss:$0 sm:$0xff]  ;;  %p1027_p9 = por %p1026_p8, %p1025_p7 }
  0x76   :  { %784 = vmatmul.mubr.msk.bf16.vlgmr.msra.gmra.mrb[0].mxu0 %vm172_vm0, %v855_v3 }
  0x77   :  { %800 = vmatpush3.bf16.msra.mxu0 %v856_v19  ;;  %p1028_p10 = pnand %p1027_p9, %p1021_p6 }
  0x78   :  { %126 = vadd.xlane.f32.xlu0 %v125_v22  ;;  %801 = vmatprep.subr.bf16.mxu0 %v857_v24  ;;  %v719_v22 = vld [vmem:[#allocation11 + $0x2] ss:$0 sm:$0xff] }
  0x79   :  { %132 = vadd.xlane.f32.xlu1 %v131_v23 }
  0x7b   :  { %802 = vmatpush3.bf16.msra.mxu0 %v857_v24 }
  0x7c   :  { %803 = vmatprep.subr.bf16.mxu0 %v858_v25 }
  0x7f   :  { %804 = vmatpush3.bf16.msra.mxu0 %v858_v25 }
  0x80   :  { %805 = vmatprep.subr.bf16.mxu0 %v859_v26 }
  0x83   :  { %806 = vmatpush3.bf16.msra.mxu0 %v859_v26 }
  0x84   :  { %807 = vmatprep.subr.bf16.mxu0 %v860_v27 }
  0x87   :  { %808 = vmatpush3.bf16.msra.mxu0 %v860_v27 }
  0x88   :  { %809 = vmatprep.subr.bf16.mxu0 %v861_v34 }
  0x8b   :  { %810 = vmatpush3.bf16.msra.mxu0 %v861_v34 }
  0x8c   :  { %811 = vmatprep.subr.bf16.mxu0 %v862_v35 }
  0x8f   :  { %812 = vmatpush3.bf16.msra.mxu0 %v862_v35 }
  0x90   :  { %813 = vmatprep.subr.bf16.mxu0 %v863_v36 }
  0x93   :  { %814 = vmatpush3.bf16.msra.mxu0 %v863_v36 }
 0x101   :  { %v124_v43 = vpop.xlane.xlu0 %123 }
 0x102   :  { %v134_v45 = vadd.f32 1.0, %v124_v43  ;;  %v130_v46 = vpop.xlane.xlu1 %129 }
 0x103   :  { %v136_v50 = vadd.f32 1.0, %v130_v46 }
 0x104   :  { %872 = vrcp.f32 %v134_v45 }
 0x105   :  { %v127_v44 = vpop.xlane.xlu0 %126 }
 0x106   :  { %v135_v47 = vadd.f32 1.0, %v127_v44  ;;  %v133_v48 = vpop.xlane.xlu1 %132 }
 0x107   :  { %v137_v49 = vadd.f32 1.0, %v133_v48 }
 0x108   :  { %874 = vrcp.f32 %v135_v47 }
 0x109   :  { %876 = vrcp.f32 %v137_v49 }
 0x10a   :  { %878 = vrcp.f32 %v136_v50 }
 0x10e   :  { %v873_v51 = vpop.eup %872 }
 0x112   :  { %v875_v52 = vpop.eup %874 }
 0x113   :  { %v877_v60 = vpop.eup %876 }
 0x114   :  { %v879_v63 = vpop.eup %878 }
 0x149   :  { %v785_v28 = vpop.f32.mrb[0].mxu0 }
 0x14a   :  { %v213_v29 = vpop.f32.mrb[1].mxu0 }
 0x14b   :  { %v786_v30 = vpop.f32.mrb[2].mxu0 }
 0x14c   :  { %v229_v31 = vpack.c.bf16 %v786_v30, %v785_v28  ;;  %v216_v32 = vpop.f32.mrb[3].mxu0 }
 0x14d   :  { %v228_v33 = vpack.c.bf16 %v216_v32, %v213_v29 }
 0x14f   :  { %788 = vmatpush3.bf16.msra.mxu1 %v228_v33 }
 0x150   :  { %793 = vmatprep.subr.bf16.mxu1 %v1062_v6 }
 0x152   :  { %790 = vmatmul.mubr.msk.bf16.vlgmr.msra.gmra.mrb[0].mxu1 %vm121_vm2, %v706_v9 }
 0x153   :  { %794 = vmatpush3.bf16.msra.mxu1 %v229_v31  ;;  %795 = vmatprep.mubr.msk.bf16.mxu1 %vm1063_vm1, %v1062_v6  ;;  %v871_v6 = vld [vmem:[#allocation10 + $0x38] sm:$0xff]  }
 0x154   :  { %819 = vmatprep.subr.bf16.mxu1 %v864_v37 }
 0x15a   :  { %796 = vmatmul.mubr.msk.bf16.vlgmr.msra.gmra.mrb[4].mxu1 %vm121_vm2, %v708_v14 }
 0x15b   :  { %820 = vmatpush3.bf16.msra.mxu1 %v864_v37 }
 0x15c   :  { %821 = vmatprep.subr.bf16.mxu1 %v865_v38 }
 0x15f   :  { %822 = vmatpush3.bf16.msra.mxu1 %v865_v38  ;;  %v728_v38 = vld [vmem:[#allocation11 + $0x5] ss:$0 sm:$0xff] }
 0x160   :  { %823 = vmatprep.subr.bf16.mxu1 %v866_v39 }
 0x163   :  { %824 = vmatpush3.bf16.msra.mxu1 %v866_v39 }
 0x164   :  { %825 = vmatprep.subr.bf16.mxu1 %v867_v40 }
 0x167   :  { %826 = vmatpush3.bf16.msra.mxu1 %v867_v40 }
 0x168   :  { %827 = vmatprep.subr.bf16.mxu1 %v868_v41 }
 0x16b   :  { %828 = vmatpush3.bf16.msra.mxu1 %v868_v41 }
 0x16c   :  { %829 = vmatprep.subr.bf16.mxu1 %v869_v42 }
 0x16f   :  { %830 = vmatpush3.bf16.msra.mxu1 %v869_v42 }
 0x170   :  { %831 = vmatprep.subr.bf16.mxu1 %v870_v5 }
 0x173   :  { %832 = vmatpush3.bf16.msra.mxu1 %v870_v5  ;;  %v729_v5 = vld [vmem:[#allocation11 + $0x3] ss:$0 sm:$0xff] }
 0x174   :  { %833 = vmatprep.subr.bf16.mxu1 %v871_v6 }
 0x177   :  { %834 = vmatpush3.bf16.msra.mxu1 %v871_v6 }
 0x225   :  { %v272_v53 = vpop.f32.mrb[0].mxu1 }
 0x226   :  { %v791_v54 = vpop.f32.mrb[1].mxu1  ;;  %v328_v56 = vmul.f32 %v873_v51, %v272_v53 }
 0x227   :  { %v275_v55 = vpop.f32.mrb[2].mxu1 }
 0x228   :  { %v329_v57 = vmul.f32 %v875_v52, %v275_v55  ;;  %v792_v58 = vpop.f32.mrb[3].mxu1 }
 0x22a   :  { %v334_v59 = vpack.c.bf16 %v329_v57, %v328_v56 }
 0x22c   :  { %815 = vmatprep.mubr.bf16.mxu0 %v334_v59 }
 0x22d   :  { %v321_v61 = vpop.f32.mrb[4].mxu1 }
 0x22e   :  { %v797_v62 = vpop.f32.mrb[5].mxu1  ;;  %v330_v1 = vmul.f32 %v879_v63, %v321_v61 }
 0x22f   :  { %v324_v0 = vpop.f32.mrb[6].mxu1 }
 0x230   :  { %v331_v2 = vmul.f32 %v877_v60, %v324_v0  ;;  %v798_v3 = vpop.f32.mrb[7].mxu1 }
 0x232   :  { %v335_v4 = vpack.c.bf16 %v331_v2, %v330_v1 }
 0x234   :  { %816 = vmatmul.mubr.bf16.vlgmr.msra.gmra.mrb[4].mxu0 %v335_v4 }
 0x307   :  { %v817_v8 = vpop.f32.mrb[4].mxu0 }
 0x308   :  { %v447_v9 = vadd.f32 %v817_v8, %v710_v7  ;;  %v438_v10 = vpop.f32.mrb[5].mxu0  ;;  %v730_v8 = vld [vmem:[#allocation11 + $0x4] ss:$0 sm:$0xff] }
 0x309   :  { %v439_v11 = vadd.f32 %v710_v7, %v438_v10  ;;  %v818_v12 = vpop.f32.mrb[6].mxu0 }
 0x30a   :  { %v450_v13 = vadd.f32 %v818_v12, %v710_v7  ;;  %v441_v14 = vpop.f32.mrb[7].mxu0  ;;  %v455_v16 = vmax.f32 %v447_v9, 0.0 }
 0x30b   :  { %v442_v15 = vadd.f32 %v710_v7, %v441_v14  ;;  %v453_v18 = vmax.f32 %v439_v11, 0.0 }
 0x30c   :  { %v456_v17 = vmax.f32 %v450_v13, 0.0 }
 0x30d   :  { %v454_v19 = vmax.f32 %v442_v15, 0.0 }
 0x30e   :  { %v458_v20 = vpack.c.bf16 %v456_v17, %v455_v16  ;;  %v731_v16 = vld [vmem:[#allocation11] ss:$0 sm:$0xff] }
 0x30f   :  { %v457_v21 = vpack.c.bf16 %v454_v19, %v453_v18 }
 0x311   :  { %835 = vmatprep.mubr.bf16.mxu1 %v457_v21 }
 0x312   :  { %836 = vmatmul.mubr.bf16.vlgmr.msra.gmra.mrb[8].mxu1 %v458_v20 }
 0x3e5   :  { %v837_v23 = vpop.f32.mrb[8].mxu1 }
 0x3e6   :  { %v561_v24 = vpop.f32.mrb[9].mxu1  ;;  %v570_v28 = vadd.f32 %v837_v23, %v719_v22 }
 0x3e7   :  { %v562_v25 = vadd.f32 %v719_v22, %v561_v24  ;;  %v838_v26 = vpop.f32.mrb[10].mxu1 }
 0x3e8   :  { %v564_v27 = vpop.f32.mrb[11].mxu1  ;;  %v573_v31 = vadd.f32 %v838_v26, %v719_v22  ;;  %v578_v33 = vadd.f32 %v570_v28, %v330_v1 }
 0x3e9   :  { %v565_v29 = vadd.f32 %v719_v22, %v564_v27  ;;  %v576_v30 = vadd.f32 %v562_v25, %v328_v56 }
 0x3ea   :  { %v579_v34 = vadd.f32 %v573_v31, %v331_v2 }
 0x3eb   :  { %581 = vadd.xlane.f32.xlu0 %v576_v30  ;;  %v577_v32 = vadd.f32 %v565_v29, %v329_v57 }
 0x3ed   :  { %583 = vadd.xlane.f32.xlu1 %v577_v32 }
 0x3ef   :  { %585 = vadd.xlane.f32.xlu0 %v578_v33 }
 0x3f1   :  { %587 = vadd.xlane.f32.xlu1 %v579_v34 }
 0x478   :  { %v582_v35 = vpop.xlane.xlu0 %581 }
 0x479   :  { %v589_v36 = vmul.f32 0.03125, %v582_v35 }
 0x47a   :  { %v584_v37 = vpop.xlane.xlu1 %583 }
 0x47b   :  { %v593_v39 = vsub.f32 %v576_v30, %v589_v36  ;;  %v590_v40 = vmul.f32 0.03125, %v584_v37 }
 0x47c   :  { %v586_v41 = vpop.xlane.xlu0 %585 }
 0x47d   :  { %v594_v42 = vsub.f32 %v577_v32, %v590_v40  ;;  %v591_v43 = vmul.f32 0.03125, %v586_v41  ;;  %v601_v44 = vmul.f32 %v728_v38, %v593_v39 }
 0x47e   :  { %v588_v45 = vpop.xlane.xlu1 %587 }
 0x47f   :  { %v595_v46 = vsub.f32 %v578_v33, %v591_v43  ;;  %v592_v47 = vmul.f32 0.03125, %v588_v45  ;;  %v605_v48 = vmul.f32 %v601_v44, %v601_v44  ;;  %v602_v49 = vmul.f32 %v728_v38, %v594_v42 }
 0x481   :  { %v596_v50 = vsub.f32 %v579_v34, %v592_v47  ;;  %609 = vadd.xlane.f32.xlu0 %v605_v48  ;;  %v606_v51 = vmul.f32 %v602_v49, %v602_v49  ;;  %v603_v52 = vmul.f32 %v728_v38, %v595_v46 }
 0x483   :  { %611 = vadd.xlane.f32.xlu1 %v606_v51  ;;  %v607_v53 = vmul.f32 %v603_v52, %v603_v52  ;;  %v604_v54 = vmul.f32 %v728_v38, %v596_v50 }
 0x485   :  { %613 = vadd.xlane.f32.xlu0 %v607_v53  ;;  %v608_v55 = vmul.f32 %v604_v54, %v604_v54 }
 0x487   :  { %615 = vadd.xlane.f32.xlu1 %v608_v55 }
 0x50e   :  { %v610_v56 = vpop.xlane.xlu0 %609 }
 0x50f   :  { %v617_v57 = vmul.f32 0.03125, %v610_v56 }
 0x510   :  { %v612_v58 = vpop.xlane.xlu1 %611 }
 0x511   :  { %v621_v59 = vadd.f32 1e-05, %v617_v57  ;;  %v618_v60 = vmul.f32 0.03125, %v612_v58 }
 0x512   :  { %v614_v61 = vpop.xlane.xlu0 %613 }
 0x513   :  { %880 = vrsqrt.f32 %v621_v59  ;;  %v622_v62 = vadd.f32 1e-05, %v618_v60  ;;  %v619_v63 = vmul.f32 0.03125, %v614_v61 }
 0x514   :  { %v616_v0 = vpop.xlane.xlu1 %615 }
 0x515   :  { %882 = vrsqrt.f32 %v622_v62  ;;  %v623_v1 = vadd.f32 1e-05, %v619_v63  ;;  %v620_v2 = vmul.f32 0.03125, %v616_v0 }
 0x517   :  { %884 = vrsqrt.f32 %v623_v1  ;;  %v624_v3 = vadd.f32 1e-05, %v620_v2 }
 0x519   :  { %886 = vrsqrt.f32 %v624_v3 }
 0x51d   :  { %v881_v4 = vpop.eup %880 }
 0x51e   :  { %v629_v6 = vmul.f32 %v881_v4, %v601_v44 }
 0x51f   :  { %v883_v7 = vpop.eup %882 }
 0x520   :  { %v630_v9 = vmul.f32 %v883_v7, %v602_v49  ;;  %v638_v10 = vmul.f32 %v729_v5, %v629_v6 }
 0x521   :  { %v885_v11 = vpop.eup %884 }
 0x522   :  { %v631_v12 = vmul.f32 %v885_v11, %v603_v52  ;;  %v639_v13 = vmul.f32 %v729_v5, %v630_v9  ;;  %v647_v14 = vadd.f32 %v730_v8, %v638_v10 }
 0x523   :  { %v887_v15 = vpop.eup %886 }
 0x524   :  { %v632_v17 = vmul.f32 %v887_v15, %v604_v54  ;;  %v640_v18 = vmul.f32 %v729_v5, %v631_v12  ;;  %v648_v19 = vadd.f32 %v730_v8, %v639_v13  ;;  %v656_v22 = vadd.f32 %v731_v16, %v647_v14 }
 0x526   :  { %v641_v20 = vmul.f32 %v729_v5, %v632_v17  ;;  %v649_v21 = vadd.f32 %v730_v8, %v640_v18  ;;  %v657_v23 = vadd.f32 %v731_v16, %v648_v19 }
 0x528   :  { %v650_v24 = vadd.f32 %v730_v8, %v641_v20  ;;  %v743_v25 = vpack.c.bf16 %v657_v23, %v656_v22  ;;  %v658_v26 = vadd.f32 %v731_v16, %v649_v21 }
 0x52a   :  { %v659_v27 = vadd.f32 %v731_v16, %v650_v24  ;;  %744 = vst [vmem:[#allocation13] sm:$0xff] %v743_v25  }
 0x52c   :  { %v748_v28 = vpack.c.bf16 %v659_v27, %v658_v26 }
 0x52e   :  { %750 = vst [vmem:[#allocation13 + $0x8] sm:$0xff] %v748_v28  }
 0x52f   :  { %1031 = shalt.err (!%p1028_p10)
}
 0x530   :  { %s1032_s24 = scalar_lea.hbm %s1213_s6, 256 }
 0x531   :  { %p1033_p11 = scmp.ne.s32.totalorder %s1213_s6, %s1032_s24  ;;  %p1036_p12 = scmp.lt.u32.totalorder %s1032_s24, %s1213_s6 }
 0x533   :  { %p1038_p13 = pnand %p1036_p12, %p1033_p11 }
 0x535   :  { %1041 = shalt.err (!%p1038_p13)
}
 0x536   :  { %691 = dma.vmem_to_hbm [thread:$0]  %s686_s21, 256, %s1213_s6, [#allocation4], %s1057_s22, %s1057_s22, %s1058_s23  }
 0x537   :  { %1050 = dma.done.wait [#allocation4], 256  }
 0x538   :  { %1051 = vsyncadd [#allocation4], 4294967040 }
 0x539   :  { %695 = vsyncpa [#allocation3], 1 }
 0x53a   :  { %696 = vsyncpa [#allocation6], 1 }
 0x53b   :  { %697 = vsyncpa [#allocation9], 1 }
 0x53c   :  { %698 = vsyncpa [#allocation12], 1 }
 0x53d   :  { %699 = vsyncpa [#allocation4], 1 }

// kernel: tpu_custom_call.1
= control target key start
LH: loop header
LB: loop body
LE: loop exit
PB: predicated region body
PF: predicated region fallthrough
CT: control target
= control target key end

     0   :  { %11 = vsyncpa [#allocation3], 0  ;;  %s1207_s0 = inlined_call_operand.hbm [shape: bf16[32,32], index: 0, kind: input, shape index: {}]   ;;  %s1208_s1 = inlined_call_operand.hbm [shape: s8[2,16,16], index: 1, kind: input, shape index: {}]   ;;  %s1209_s2 = inlined_call_operand.hbm [shape: bf16[32,128], index: 2, kind: input, shape index: {}]   ;;  %s1210_s3 = inlined_call_operand.hbm [shape: bf16[128,128], index: 3, kind: input, shape index: {}]   ;;  %s1211_s4 = inlined_call_operand.hbm [shape: bf16[128,128], index: 4, kind: input, shape index: {}]   ;;  %s1212_s5 = inlined_call_operand.hbm [shape: f32[8,128], index: 5, kind: input, shape index: {}]   ;;  %s1213_s6 = inlined_call_operand.hbm [shape: bf16[32,128], index: 6, kind: output, shape index: {}]  }
   0x1   :  { %12 = vsyncpa [#allocation6], 0 }
   0x2   :  { %13 = vsyncpa [#allocation9], 0 }
   0x3   :  { %14 = vsyncpa [#allocation12], 0 }
   0x4   :  { %15 = vsyncpa [#allocation4], 0  ;;  %s1052_s21 = smov [#allocation5]   ;;  %s888_s25 = scalar_lea.hbm %s1208_s1, 128 }
   0x5   :  { %s33_s22 = sshll.u32 %s1052_s21, 4  ;;  %p889_p0 = scmp.ne.s32.totalorder %s1208_s1, %s888_s25  ;;  %s34_s22 = int_to_ptr.vmem [resolvable:$true] %s33_s22 }
   0x6   :  { %p892_p1 = scmp.lt.u32.totalorder %s888_s25, %s1208_s1 }
   0x8   :  { %p894_p2 = pnand %p892_p1, %p889_p0 }
   0xa   :  { %897 = shalt.err (!%p894_p2)
}
   0xb   :  { %s898_s30 = scalar_lea.vmem %s34_s22, 128  ;;  %p903_p4 = scmp.lt.s32.totalorder %s34_s22, %s34_s22 }
   0xc   :  { %p899_p3 = scmp.ne.s32.totalorder %s34_s22, %s898_s30  ;;  %p904_p5 = scmp.lt.s32.totalorder %s898_s30, %s898_s30 }
   0xe   :  { %p905_p6 = por %p904_p5, %p903_p4 }
  0x10   :  { %p906_p7 = pnand %p905_p6, %p899_p3 }
  0x12   :  { %909 = shalt.err (!%p906_p7)
}
  0x13   :  { %s1053_s7 = smov 32   ;;  %s1054_s8 = smov 2  }
  0x14   :  { %39 = dma.hbm_to_vmem [thread:$0]  %s1208_s1, 128, %s34_s22, [#allocation6], %s1053_s7, %s1053_s7, %s1054_s8  }
  0x15   :  { %s1055_s11 = smov [#allocation8]   ;;  %s1056_s13 = smov [#allocation2]  }
  0x16   :  { %s57_s12 = sshll.u32 %s1055_s11, 4  ;;  %s21_s14 = sshll.u32 %s1056_s13, 4  ;;  %s58_s12 = int_to_ptr.vmem [resolvable:$true] %s57_s12  ;;  %s22_s14 = int_to_ptr.vmem [resolvable:$true] %s21_s14 }
  0x17   :  { %s910_s17 = scalar_lea.hbm %s1210_s3, 1024 }
  0x18   :  { %p911_p8 = scmp.ne.s32.totalorder %s1210_s3, %s910_s17  ;;  %p914_p9 = scmp.lt.u32.totalorder %s910_s17, %s1210_s3 }
  0x1a   :  { %p916_p10 = pnand %p914_p9, %p911_p8 }
  0x1c   :  { %919 = shalt.err (!%p916_p10)
}
  0x1d   :  { %s920_s1 = scalar_lea.vmem %s58_s12, 1024  ;;  %p925_p12 = scmp.lt.s32.totalorder %s58_s12, %s58_s12 }
  0x1e   :  { %p921_p11 = scmp.ne.s32.totalorder %s58_s12, %s920_s1  ;;  %p926_p13 = scmp.lt.s32.totalorder %s920_s1, %s920_s1 }
  0x20   :  { %p927_p0 = por %p926_p13, %p925_p12 }
  0x22   :  { %p928_p1 = pnand %p927_p0, %p921_p11 }
  0x24   :  { %931 = shalt.err (!%p928_p1)
}
  0x25   :  { %s1057_s22 = smov 64   ;;  %s1058_s23 = smov 4  }
  0x26   :  { %63 = dma.hbm_to_vmem [thread:$0]  %s1210_s3, 1024, %s58_s12, [#allocation9], %s1057_s22, %s1057_s22, %s1058_s23  }
  0x27   :  { %s932_s28 = scalar_lea.hbm %s1207_s0, 256 }
  0x28   :  { %p933_p2 = scmp.ne.s32.totalorder %s1207_s0, %s932_s28  ;;  %p936_p3 = scmp.lt.u32.totalorder %s932_s28, %s1207_s0 }
  0x2a   :  { %p938_p4 = pnand %p936_p3, %p933_p2 }
  0x2c   :  { %941 = shalt.err (!%p938_p4)
}
  0x2d   :  { %s942_s9 = scalar_lea.vmem %s22_s14, 256  ;;  %p947_p6 = scmp.lt.s32.totalorder %s22_s14, %s22_s14 }
  0x2e   :  { %p943_p5 = scmp.ne.s32.totalorder %s22_s14, %s942_s9  ;;  %p948_p7 = scmp.lt.s32.totalorder %s942_s9, %s942_s9 }
  0x30   :  { %p949_p8 = por %p948_p7, %p947_p6 }
  0x32   :  { %p950_p9 = pnand %p949_p8, %p943_p5 }
  0x34   :  { %953 = shalt.err (!%p950_p9)
}
  0x35   :  { %27 = dma.hbm_to_vmem [thread:$0]  %s1207_s0, 256, %s22_s14, [#allocation3], %s1057_s22, %s1057_s22, %s1058_s23  }
  0x36   :  { %s1059_s11 = smov [#allocation7]   ;;  %s1060_s13 = smov [#allocation10]  }
  0x37   :  { %s45_s12 = sshll.u32 %s1059_s11, 4  ;;  %s69_s15 = sshll.u32 %s1060_s13, 4  ;;  %s46_s12 = int_to_ptr.vmem [resolvable:$true] %s45_s12  ;;  %s70_s15 = int_to_ptr.vmem [resolvable:$true] %s69_s15 }
  0x38   :  { %s954_s18 = scalar_lea.hbm %s1209_s2, 256 }
  0x39   :  { %p955_p10 = scmp.ne.s32.totalorder %s1209_s2, %s954_s18  ;;  %p958_p11 = scmp.lt.u32.totalorder %s954_s18, %s1209_s2 }
  0x3b   :  { %p960_p12 = pnand %p958_p11, %p955_p10 }
  0x3d   :  { %963 = shalt.err (!%p960_p12)
}
  0x3e   :  { %s964_s0 = scalar_lea.vmem %s46_s12, 256  ;;  %p969_p0 = scmp.lt.s32.totalorder %s46_s12, %s46_s12 }
  0x3f   :  { %p965_p13 = scmp.ne.s32.totalorder %s46_s12, %s964_s0  ;;  %p970_p1 = scmp.lt.s32.totalorder %s964_s0, %s964_s0 }
  0x41   :  { %p971_p2 = por %p970_p1, %p969_p0 }
  0x43   :  { %p972_p3 = pnand %p971_p2, %p965_p13 }
  0x45   :  { %975 = shalt.err (!%p972_p3)
}
  0x46   :  { %51 = dma.hbm_to_vmem [thread:$0]  %s1209_s2, 256, %s46_s12, [#allocation6], %s1057_s22, %s1057_s22, %s1058_s23  }
  0x47   :  { %s976_s27 = scalar_lea.hbm %s1211_s4, 1024 }
  0x48   :  { %p977_p4 = scmp.ne.s32.totalorder %s1211_s4, %s976_s27  ;;  %p980_p5 = scmp.lt.u32.totalorder %s976_s27, %s1211_s4 }
  0x4a   :  { %p982_p6 = pnand %p980_p5, %p977_p4 }
  0x4c   :  { %985 = shalt.err (!%p982_p6)
}
  0x4d   :  { %s986_s8 = scalar_lea.vmem %s70_s15, 1024  ;;  %p991_p8 = scmp.lt.s32.totalorder %s70_s15, %s70_s15 }
  0x4e   :  { %p987_p7 = scmp.ne.s32.totalorder %s70_s15, %s986_s8  ;;  %p992_p9 = scmp.lt.s32.totalorder %s986_s8, %s986_s8 }
  0x50   :  { %p993_p10 = por %p992_p9, %p991_p8 }
  0x52   :  { %p994_p11 = pnand %p993_p10, %p987_p7 }
  0x54   :  { %997 = shalt.err (!%p994_p11)
}
  0x55   :  { %75 = dma.hbm_to_vmem [thread:$0]  %s1211_s4, 1024, %s70_s15, [#allocation9], %s1057_s22, %s1057_s22, %s1058_s23  }
  0x56   :  { %s1061_s3 = smov [#allocation11]   ;;  %s998_s13 = scalar_lea.hbm %s1212_s5, 128 }
  0x57   :  { %s82_s10 = sshll.u32 %s1061_s3, 4  ;;  %p999_p12 = scmp.ne.s32.totalorder %s1212_s5, %s998_s13  ;;  %s83_s10 = int_to_ptr.vmem [resolvable:$true] %s82_s10 }
  0x58   :  { %p1002_p13 = scmp.lt.u32.totalorder %s998_s13, %s1212_s5 }
  0x5a   :  { %p1004_p0 = pnand %p1002_p13, %p999_p12 }
  0x5c   :  { %1007 = shalt.err (!%p1004_p0)
}
  0x5d   :  { %s1008_s20 = scalar_lea.vmem %s83_s10, 128  ;;  %p1013_p2 = scmp.lt.s32.totalorder %s83_s10, %s83_s10 }
  0x5e   :  { %p1009_p1 = scmp.ne.s32.totalorder %s83_s10, %s1008_s20  ;;  %p1014_p3 = scmp.lt.s32.totalorder %s1008_s20, %s1008_s20 }
  0x60   :  { %p1015_p4 = por %p1014_p3, %p1013_p2 }
  0x62   :  { %p1016_p5 = pnand %p1015_p4, %p1009_p1 }
  0x64   :  { %1019 = shalt.err (!%p1016_p5)
}
  0x65   :  { %85 = dma.hbm_to_vmem [thread:$0]  %s1212_s5, 128, %s83_s10, [#allocation12]  }
  0x66   :  { %1042 = dma.done.wait [#allocation3], 256  }
  0x67   :  { %1043 = vsyncadd [#allocation3], 4294967040 }
  0x68   :  { %1044 = dma.done.wait [#allocation6], 384  }
  0x69   :  { %1045 = vsyncadd [#allocation6], 4294966912 }
  0x6a   :  { %1046 = dma.done.wait [#allocation9], 2048  }
  0x6b   :  { %1047 = vsyncadd [#allocation9], 4294965248 }
  0x6c   :  { %1048 = dma.done.wait [#allocation12], 128  }
  0x6d   :  { %1049 = vsyncadd [#allocation12], 4294967168  ;;  %v852_v0 = vld [vmem:[#allocation7] sm:$0xff]   ;;  %v853_v1 = vld [vmem:[#allocation7 + $0x8] sm:$0xff]   ;;  %vm172_vm0 = vcmask 261120   ;;  %v1062_v6 = vmov 0.0  }
  0x6e   :  { %779 = vmatprep.subr.bf16.mxu0 %v852_v0  ;;  %v854_v2 = vld [vmem:[#allocation2] sm:$0xff]   ;;  %v855_v3 = vld [vmem:[#allocation2 + $0x8] sm:$0xff]   ;;  %v109_v4 = vld [vmem:[#allocation5] sm:$0x3]  ;;  %787 = vmatprep.subr.bf16.mxu1 %v1062_v6  ;;  %vm1063_vm1 = vmmov 0   ;;  %vm121_vm2 = vcmask 130048  }
  0x6f   :  { %780 = vmatpush3.bf16.msra.mxu0 %v852_v0  ;;  %783 = vmatprep.mubr.msk.bf16.mxu0 %vm172_vm0, %v854_v2  ;;  %v110_v5 = vld [vmem:[#allocation5 + $0x2] sm:$0x3]  ;;  %v113_v7 = vunpack.c.l.s8.bf16 %v109_v4  ;;  %v111_v10 = vld [vmem:[#allocation5 + $0x4] sm:$0x3]  ;;  %v112_v11 = vld [vmem:[#allocation5 + $0x6] sm:$0x3] }
  0x70   :  { %781 = vmatprep.subr.bf16.mxu0 %v853_v1  ;;  %v114_v8 = vunpack.c.l.s8.bf16 %v110_v5  ;;  %789 = vmatprep.mubr.msk.bf16.mxu1 %vm1063_vm1, %v1062_v6  ;;  %v115_v12 = vunpack.c.l.s8.bf16 %v111_v10  ;;  %v116_v13 = vunpack.c.l.s8.bf16 %v112_v11  ;;  %v856_v19 = vld [vmem:[#allocation8] sm:$0xff]   ;;  %v857_v24 = vld [vmem:[#allocation8 + $0x8] sm:$0xff]   ;;  %v858_v25 = vld [vmem:[#allocation8 + $0x10] sm:$0xff]   ;;  %s1064_s5 = smov [#allocation13]  }
  0x71   :  { %v117_v15 = vunpack.c.l.bf16 %v113_v7  ;;  %v859_v26 = vld [vmem:[#allocation8 + $0x18] sm:$0xff]   ;;  %v860_v27 = vld [vmem:[#allocation8 + $0x20] sm:$0xff]   ;;  %v861_v34 = vld [vmem:[#allocation8 + $0x28] sm:$0xff]   ;;  %s685_s21 = sshll.u32 %s1064_s5, 4  ;;  %s686_s21 = int_to_ptr.vmem [resolvable:$true] %s685_s21 }
  0x72   :  { %v706_v9 = vcombine.low %v113_v7, %v114_v8  ;;  %v708_v14 = vcombine.low %v115_v12, %v116_v13  ;;  %v118_v16 = vunpack.c.l.bf16 %v114_v8  ;;  %v119_v17 = vunpack.c.l.bf16 %v115_v12  ;;  %v862_v35 = vld [vmem:[#allocation8 + $0x30] sm:$0xff]   ;;  %v863_v36 = vld [vmem:[#allocation8 + $0x38] sm:$0xff]   ;;  %v864_v37 = vld [vmem:[#allocation10] sm:$0xff]   ;;  %s1020_s1 = scalar_lea.vmem %s686_s21, 256  ;;  %p1025_p7 = scmp.lt.s32.totalorder %s686_s21, %s686_s21 }
  0x73   :  { %782 = vmatpush3.bf16.msra.mxu0 %v853_v1  ;;  %v120_v18 = vunpack.c.l.bf16 %v116_v13  ;;  %v122_v20 = vsel %vm121_vm2, %v117_v15, 0.0  ;;  %v865_v38 = vld [vmem:[#allocation10 + $0x8] sm:$0xff]   ;;  %v866_v39 = vld [vmem:[#allocation10 + $0x10] sm:$0xff]   ;;  %v867_v40 = vld [vmem:[#allocation10 + $0x18] sm:$0xff]   ;;  %p1021_p6 = scmp.ne.s32.totalorder %s686_s21, %s1020_s1  ;;  %p1026_p8 = scmp.lt.s32.totalorder %s1020_s1, %s1020_s1 }
  0x74   :  { %v128_v21 = vsel %vm121_vm2, %v119_v17, 0.0  ;;  %799 = vmatprep.subr.bf16.mxu0 %v856_v19  ;;  %123 = vadd.xlane.f32.xlu0 %v122_v20  ;;  %v125_v22 = vsel %vm121_vm2, %v118_v16, 0.0  ;;  %v868_v41 = vld [vmem:[#allocation10 + $0x20] sm:$0xff]   ;;  %v869_v42 = vld [vmem:[#allocation10 + $0x28] sm:$0xff]   ;;  %v870_v5 = vld [vmem:[#allocation10 + $0x30] sm:$0xff]  }
  0x75   :  { %129 = vadd.xlane.f32.xlu1 %v128_v21  ;;  %v131_v23 = vsel %vm121_vm2, %v120_v18, 0.0  ;;  %v710_v7 = vld [vmem:[#allocation11 + $0x1] ss:$0 sm:$0xff]  ;;  %p1027_p9 = por %p1026_p8, %p1025_p7 }
  0x76   :  { %784 = vmatmul.mubr.msk.bf16.vlgmr.msra.gmra.mrb[0].mxu0 %vm172_vm0, %v855_v3 }
  0x77   :  { %800 = vmatpush3.bf16.msra.mxu0 %v856_v19  ;;  %p1028_p10 = pnand %p1027_p9, %p1021_p6 }
  0x78   :  { %126 = vadd.xlane.f32.xlu0 %v125_v22  ;;  %801 = vmatprep.subr.bf16.mxu0 %v857_v24  ;;  %v719_v22 = vld [vmem:[#allocation11 + $0x2] ss:$0 sm:$0xff] }
  0x79   :  { %132 = vadd.xlane.f32.xlu1 %v131_v23 }
  0x7b   :  { %802 = vmatpush3.bf16.msra.mxu0 %v857_v24 }
  0x7c   :  { %803 = vmatprep.subr.bf16.mxu0 %v858_v25 }
  0x7f   :  { %804 = vmatpush3.bf16.msra.mxu0 %v858_v25 }
  0x80   :  { %805 = vmatprep.subr.bf16.mxu0 %v859_v26 }
  0x83   :  { %806 = vmatpush3.bf16.msra.mxu0 %v859_v26 }
  0x84   :  { %807 = vmatprep.subr.bf16.mxu0 %v860_v27 }
  0x87   :  { %808 = vmatpush3.bf16.msra.mxu0 %v860_v27 }
  0x88   :  { %809 = vmatprep.subr.bf16.mxu0 %v861_v34 }
  0x8b   :  { %810 = vmatpush3.bf16.msra.mxu0 %v861_v34 }
  0x8c   :  { %811 = vmatprep.subr.bf16.mxu0 %v862_v35 }
  0x8f   :  { %812 = vmatpush3.bf16.msra.mxu0 %v862_v35 }
  0x90   :  { %813 = vmatprep.subr.bf16.mxu0 %v863_v36 }
  0x93   :  { %814 = vmatpush3.bf16.msra.mxu0 %v863_v36 }
 0x101   :  { %v124_v43 = vpop.xlane.xlu0 %123 }
 0x102   :  { %v134_v45 = vadd.f32 1.0, %v124_v43  ;;  %v130_v46 = vpop.xlane.xlu1 %129 }
 0x103   :  { %v136_v50 = vadd.f32 1.0, %v130_v46 }
 0x104   :  { %872 = vrcp.f32 %v134_v45 }
 0x105   :  { %v127_v44 = vpop.xlane.xlu0 %126 }
 0x106   :  { %v135_v47 = vadd.f32 1.0, %v127_v44  ;;  %v133_v48 = vpop.xlane.xlu1 %132 }
 0x107   :  { %v137_v49 = vadd.f32 1.0, %v133_v48 }
 0x108   :  { %874 = vrcp.f32 %v135_v47 }
 0x109   :  { %876 = vrcp.f32 %v137_v49 }
 0x10a   :  { %878 = vrcp.f32 %v136_v50 }
 0x10e   :  { %v873_v51 = vpop.eup %872 }
 0x112   :  { %v875_v52 = vpop.eup %874 }
 0x113   :  { %v877_v60 = vpop.eup %876 }
 0x114   :  { %v879_v63 = vpop.eup %878 }
 0x149   :  { %v785_v28 = vpop.f32.mrb[0].mxu0 }
 0x14a   :  { %v213_v29 = vpop.f32.mrb[1].mxu0 }
 0x14b   :  { %v786_v30 = vpop.f32.mrb[2].mxu0 }
 0x14c   :  { %v229_v31 = vpack.c.bf16 %v786_v30, %v785_v28  ;;  %v216_v32 = vpop.f32.mrb[3].mxu0 }
 0x14d   :  { %v228_v33 = vpack.c.bf16 %v216_v32, %v213_v29 }
 0x14f   :  { %788 = vmatpush3.bf16.msra.mxu1 %v228_v33 }
 0x150   :  { %793 = vmatprep.subr.bf16.mxu1 %v1062_v6 }
 0x152   :  { %790 = vmatmul.mubr.msk.bf16.vlgmr.msra.gmra.mrb[0].mxu1 %vm121_vm2, %v706_v9 }
 0x153   :  { %794 = vmatpush3.bf16.msra.mxu1 %v229_v31  ;;  %795 = vmatprep.mubr.msk.bf16.mxu1 %vm1063_vm1, %v1062_v6  ;;  %v871_v6 = vld [vmem:[#allocation10 + $0x38] sm:$0xff]  }
 0x154   :  { %819 = vmatprep.subr.bf16.mxu1 %v864_v37 }
 0x15a   :  { %796 = vmatmul.mubr.msk.bf16.vlgmr.msra.gmra.mrb[4].mxu1 %vm121_vm2, %v708_v14 }
 0x15b   :  { %820 = vmatpush3.bf16.msra.mxu1 %v864_v37 }
 0x15c   :  { %821 = vmatprep.subr.bf16.mxu1 %v865_v38 }
 0x15f   :  { %822 = vmatpush3.bf16.msra.mxu1 %v865_v38  ;;  %v728_v38 = vld [vmem:[#allocation11 + $0x5] ss:$0 sm:$0xff] }
 0x160   :  { %823 = vmatprep.subr.bf16.mxu1 %v866_v39 }
 0x163   :  { %824 = vmatpush3.bf16.msra.mxu1 %v866_v39 }
 0x164   :  { %825 = vmatprep.subr.bf16.mxu1 %v867_v40 }
 0x167   :  { %826 = vmatpush3.bf16.msra.mxu1 %v867_v40 }
 0x168   :  { %827 = vmatprep.subr.bf16.mxu1 %v868_v41 }
 0x16b   :  { %828 = vmatpush3.bf16.msra.mxu1 %v868_v41 }
 0x16c   :  { %829 = vmatprep.subr.bf16.mxu1 %v869_v42 }
 0x16f   :  { %830 = vmatpush3.bf16.msra.mxu1 %v869_v42 }
 0x170   :  { %831 = vmatprep.subr.bf16.mxu1 %v870_v5 }
 0x173   :  { %832 = vmatpush3.bf16.msra.mxu1 %v870_v5  ;;  %v729_v5 = vld [vmem:[#allocation11 + $0x3] ss:$0 sm:$0xff] }
 0x174   :  { %833 = vmatprep.subr.bf16.mxu1 %v871_v6 }
 0x177   :  { %834 = vmatpush3.bf16.msra.mxu1 %v871_v6 }
 0x225   :  { %v272_v53 = vpop.f32.mrb[0].mxu1 }
 0x226   :  { %v791_v54 = vpop.f32.mrb[1].mxu1  ;;  %v328_v56 = vmul.f32 %v873_v51, %v272_v53 }
 0x227   :  { %v275_v55 = vpop.f32.mrb[2].mxu1 }
 0x228   :  { %v329_v57 = vmul.f32 %v875_v52, %v275_v55  ;;  %v792_v58 = vpop.f32.mrb[3].mxu1 }
 0x22a   :  { %v334_v59 = vpack.c.bf16 %v329_v57, %v328_v56 }
 0x22c   :  { %815 = vmatprep.mubr.bf16.mxu0 %v334_v59 }
 0x22d   :  { %v321_v61 = vpop.f32.mrb[4].mxu1 }
 0x22e   :  { %v797_v62 = vpop.f32.mrb[5].mxu1  ;;  %v330_v1 = vmul.f32 %v879_v63, %v321_v61 }
 0x22f   :  { %v324_v0 = vpop.f32.mrb[6].mxu1 }
 0x230   :  { %v331_v2 = vmul.f32 %v877_v60, %v324_v0  ;;  %v798_v3 = vpop.f32.mrb[7].mxu1 }
 0x232   :  { %v335_v4 = vpack.c.bf16 %v331_v2, %v330_v1 }
 0x234   :  { %816 = vmatmul.mubr.bf16.vlgmr.msra.gmra.mrb[4].mxu0 %v335_v4 }
 0x307   :  { %v817_v8 = vpop.f32.mrb[4].mxu0 }
 0x308   :  { %v447_v9 = vadd.f32 %v817_v8, %v710_v7  ;;  %v438_v10 = vpop.f32.mrb[5].mxu0  ;;  %v730_v8 = vld [vmem:[#allocation11 + $0x4] ss:$0 sm:$0xff] }
 0x309   :  { %v439_v11 = vadd.f32 %v710_v7, %v438_v10  ;;  %v818_v12 = vpop.f32.mrb[6].mxu0 }
 0x30a   :  { %v450_v13 = vadd.f32 %v818_v12, %v710_v7  ;;  %v441_v14 = vpop.f32.mrb[7].mxu0  ;;  %v455_v16 = vmax.f32 %v447_v9, 0.0 }
 0x30b   :  { %v442_v15 = vadd.f32 %v710_v7, %v441_v14  ;;  %v453_v18 = vmax.f32 %v439_v11, 0.0 }
 0x30c   :  { %v456_v17 = vmax.f32 %v450_v13, 0.0 }
 0x30d   :  { %v454_v19 = vmax.f32 %v442_v15, 0.0 }
 0x30e   :  { %v458_v20 = vpack.c.bf16 %v456_v17, %v455_v16  ;;  %v731_v16 = vld [vmem:[#allocation11] ss:$0 sm:$0xff] }
 0x30f   :  { %v457_v21 = vpack.c.bf16 %v454_v19, %v453_v18 }
 0x311   :  { %835 = vmatprep.mubr.bf16.mxu1 %v457_v21 }
 0x312   :  { %836 = vmatmul.mubr.bf16.vlgmr.msra.gmra.mrb[8].mxu1 %v458_v20 }
 0x3e5   :  { %v837_v23 = vpop.f32.mrb[8].mxu1 }
 0x3e6   :  { %v561_v24 = vpop.f32.mrb[9].mxu1  ;;  %v570_v28 = vadd.f32 %v837_v23, %v719_v22 }
 0x3e7   :  { %v562_v25 = vadd.f32 %v719_v22, %v561_v24  ;;  %v838_v26 = vpop.f32.mrb[10].mxu1 }
 0x3e8   :  { %v564_v27 = vpop.f32.mrb[11].mxu1  ;;  %v573_v31 = vadd.f32 %v838_v26, %v719_v22  ;;  %v578_v33 = vadd.f32 %v570_v28, %v330_v1 }
 0x3e9   :  { %v565_v29 = vadd.f32 %v719_v22, %v564_v27  ;;  %v576_v30 = vadd.f32 %v562_v25, %v328_v56 }
 0x3ea   :  { %v579_v34 = vadd.f32 %v573_v31, %v331_v2 }
 0x3eb   :  { %581 = vadd.xlane.f32.xlu0 %v576_v30  ;;  %v577_v32 = vadd.f32 %v565_v29, %v329_v57 }
 0x3ed   :  { %583 = vadd.xlane.f32.xlu1 %v577_v32 }
 0x3ef   :  { %585 = vadd.xlane.f32.xlu0 %v578_v33 }
 0x3f1   :  { %587 = vadd.xlane.f32.xlu1 %v579_v34 }
 0x478   :  { %v582_v35 = vpop.xlane.xlu0 %581 }
 0x479   :  { %v589_v36 = vmul.f32 0.03125, %v582_v35 }
 0x47a   :  { %v584_v37 = vpop.xlane.xlu1 %583 }
 0x47b   :  { %v593_v39 = vsub.f32 %v576_v30, %v589_v36  ;;  %v590_v40 = vmul.f32 0.03125, %v584_v37 }
 0x47c   :  { %v586_v41 = vpop.xlane.xlu0 %585 }
 0x47d   :  { %v594_v42 = vsub.f32 %v577_v32, %v590_v40  ;;  %v591_v43 = vmul.f32 0.03125, %v586_v41  ;;  %v601_v44 = vmul.f32 %v728_v38, %v593_v39 }
 0x47e   :  { %v588_v45 = vpop.xlane.xlu1 %587 }
 0x47f   :  { %v595_v46 = vsub.f32 %v578_v33, %v591_v43  ;;  %v592_v47 = vmul.f32 0.03125, %v588_v45  ;;  %v605_v48 = vmul.f32 %v601_v44, %v601_v44  ;;  %v602_v49 = vmul.f32 %v728_v38, %v594_v42 }
 0x481   :  { %v596_v50 = vsub.f32 %v579_v34, %v592_v47  ;;  %609 = vadd.xlane.f32.xlu0 %v605_v48  ;;  %v606_v51 = vmul.f32 %v602_v49, %v602_v49  ;;  %v603_v52 = vmul.f32 %v728_v38, %v595_v46 }
 0x483   :  { %611 = vadd.xlane.f32.xlu1 %v606_v51  ;;  %v607_v53 = vmul.f32 %v603_v52, %v603_v52  ;;  %v604_v54 = vmul.f32 %v728_v38, %v596_v50 }
 0x485   :  { %613 = vadd.xlane.f32.xlu0 %v607_v53  ;;  %v608_v55 = vmul.f32 %v604_v54, %v604_v54 }
 0x487   :  { %615 = vadd.xlane.f32.xlu1 %v608_v55 }
 0x50e   :  { %v610_v56 = vpop.xlane.xlu0 %609 }
 0x50f   :  { %v617_v57 = vmul.f32 0.03125, %v610_v56 }
 0x510   :  { %v612_v58 = vpop.xlane.xlu1 %611 }
 0x511   :  { %v621_v59 = vadd.f32 1e-05, %v617_v57  ;;  %v618_v60 = vmul.f32 0.03125, %v612_v58 }
 0x512   :  { %v614_v61 = vpop.xlane.xlu0 %613 }
 0x513   :  { %880 = vrsqrt.f32 %v621_v59  ;;  %v622_v62 = vadd.f32 1e-05, %v618_v60  ;;  %v619_v63 = vmul.f32 0.03125, %v614_v61 }
 0x514   :  { %v616_v0 = vpop.xlane.xlu1 %615 }
 0x515   :  { %882 = vrsqrt.f32 %v622_v62  ;;  %v623_v1 = vadd.f32 1e-05, %v619_v63  ;;  %v620_v2 = vmul.f32 0.03125, %v616_v0 }
 0x517   :  { %884 = vrsqrt.f32 %v623_v1  ;;  %v624_v3 = vadd.f32 1e-05, %v620_v2 }
 0x519   :  { %886 = vrsqrt.f32 %v624_v3 }
 0x51d   :  { %v881_v4 = vpop.eup %880 }
 0x51e   :  { %v629_v6 = vmul.f32 %v881_v4, %v601_v44 }
 0x51f   :  { %v883_v7 = vpop.eup %882 }
 0x520   :  { %v630_v9 = vmul.f32 %v883_v7, %v602_v49  ;;  %v638_v10 = vmul.f32 %v729_v5, %v629_v6 }
 0x521   :  { %v885_v11 = vpop.eup %884 }
 0x522   :  { %v631_v12 = vmul.f32 %v885_v11, %v603_v52  ;;  %v639_v13 = vmul.f32 %v729_v5, %v630_v9  ;;  %v647_v14 = vadd.f32 %v730_v8, %v638_v10 }
 0x523   :  { %v887_v15 = vpop.eup %886 }
 0x524   :  { %v632_v17 = vmul.f32 %v887_v15, %v604_v54  ;;  %v640_v18 = vmul.f32 %v729_v5, %v631_v12  ;;  %v648_v19 = vadd.f32 %v730_v8, %v639_v13  ;;  %v656_v22 = vadd.f32 %v731_v16, %v647_v14 }
 0x526   :  { %v641_v20 = vmul.f32 %v729_v5, %v632_v17  ;;  %v649_v21 = vadd.f32 %v730_v8, %v640_v18  ;;  %v657_v23 = vadd.f32 %v731_v16, %v648_v19 }
 0x528   :  { %v650_v24 = vadd.f32 %v730_v8, %v641_v20  ;;  %v743_v25 = vpack.c.bf16 %v657_v23, %v656_v22  ;;  %v658_v26 = vadd.f32 %v731_v16, %v649_v21 }
 0x52a   :  { %v659_v27 = vadd.f32 %v731_v16, %v650_v24  ;;  %744 = vst [vmem:[#allocation13] sm:$0xff] %v743_v25  }
 0x52c   :  { %v748_v28 = vpack.c.bf16 %v659_v27, %v658_v26 }
 0x52e   :  { %750 = vst [vmem:[#allocation13 + $0x8] sm:$0xff] %v748_v28  }
 0x52f   :  { %1031 = shalt.err (!%p1028_p10)
}
 0x530   :  { %s1032_s24 = scalar_lea.hbm %s1213_s6, 256 }
 0x531   :  { %p1033_p11 = scmp.ne.s32.totalorder %s1213_s6, %s1032_s24  ;;  %p1036_p12 = scmp.lt.u32.totalorder %s1032_s24, %s1213_s6 }
 0x533   :  { %p1038_p13 = pnand %p1036_p12, %p1033_p11 }
 0x535   :  { %1041 = shalt.err (!%p1038_p13)
}
 0x536   :  { %691 = dma.vmem_to_hbm [thread:$0]  %s686_s21, 256, %s1213_s6, [#allocation4], %s1057_s22, %s1057_s22, %s1058_s23  }
 0x537   :  { %1050 = dma.done.wait [#allocation4], 256  }
 0x538   :  { %1051 = vsyncadd [#allocation4], 4294967040 }
 0x539   :  { %695 = vsyncpa [#allocation3], 1 }
 0x53a   :  { %696 = vsyncpa [#allocation6], 1 }
 0x53b   :  { %697 = vsyncpa [#allocation9], 1 }
 0x53c   :  { %698 = vsyncpa [#allocation12], 1 }
 0x53d   :  { %699 = vsyncpa [#allocation4], 1 }

</bundles_post_ra>
